<compile_context>
chip_gen: v6e
topology: v6e:2x2x1
jax: 0.10.0
libtpu: 0.0.40
codegen_flags: <defaults>
</compile_context>

<pallas_src>
import functools
import math

import jax
import jax.numpy as jnp
from jax.experimental import pallas as pl
from jax.experimental.pallas import tpu as pltpu


MATMUL_DTYPE = jnp.bfloat16   # MXU-native operand dtype; accumulation is f32


# ----------------------------- kernel helpers -----------------------------

def _layernorm(x, w, b, eps=1e-5):
    mu = jnp.mean(x, axis=-1, keepdims=True)
    var = jnp.mean((x - mu) ** 2, axis=-1, keepdims=True)
    return (x - mu) * jax.lax.rsqrt(var + eps) * w + b


def _gelu_exact(x):
    # PyTorch F.gelu default = exact erf-based GELU (f32 elementwise math).
    return 0.5 * x * (1.0 + jax.lax.erf(x * 0.7071067811865476))


def _mm(a, w):
    # bf16 MXU operands, f32 accumulation.
    return jnp.dot(a.astype(MATMUL_DTYPE), w.astype(MATMUL_DTYPE),
                   preferred_element_type=jnp.float32)


# ------------------------------ fused kernel -------------------------------

def fused_encoder_kernel(
    x_ref, pos_ref, pw_ref, pb_ref,
    wqkv_ref, bqkv_ref, wo_ref, bo_ref,
    w1_ref, b1_ref, w2_ref, b2_ref,
    ln1w_ref, ln1b_ref, ln2w_ref, ln2b_ref,
    o_ref, *, num_heads,
):
    layer = pl.program_id(1)
    TB, S, E = o_ref.shape            # batch block, seq len, embed dim
    H = num_heads
    hd = E // H
    M = TB * S                        # matmul row count for every weight matmul

    # Grid step (b, 0) also performs input projection + positional encoding.
    # CORRECTNESS NOTE: the (TB, S, E) activation lives in o_ref's VMEM block
    # for the whole layer sweep.  This relies on the layer axis being the LAST
    # grid axis, marked "arbitrary" (sequential), with an output index_map that
    # ignores it -- do not reorder the grid or mark the layer axis parallel.
    @pl.when(layer == 0)
    def _():
        x_in = x_ref[...].reshape(M, -1)                           # (M, in_dim)
        proj = _mm(x_in, pw_ref[...]) + pb_ref[...] + pos_ref[...]  # (M, E) f32
        o_ref[...] = proj.reshape(TB, S, E)

    x = o_ref[...].reshape(M, E)                                    # (M, E) f32

    # ---- multi-head self attention (post-norm, mask=None, eval: no dropout) ----
    # 1/sqrt(head_dim) is folded into the Q projection weights at init.
    qkv = _mm(x, wqkv_ref[...]) + bqkv_ref[...]                     # (M, 3E) f32
    qkv3 = qkv.astype(MATMUL_DTYPE).reshape(TB, S, 3 * E)           # one cast

    def split_heads(base):
        # (head-major, batch-minor) attention batch: piece h is head h's
        # (TB, S, hd) slab -> concatenated to (H*TB, S, hd).
        return jnp.concatenate(
            [qkv3[:, :, base + h * hd: base + (h + 1) * hd] for h in range(H)],
            axis=0)

    q_h = split_heads(0)
    k_h = split_heads(E)
    v_h = split_heads(2 * E)

    s = jnp.einsum("bqd,bkd->bqk", q_h, k_h,
                   preferred_element_type=jnp.float32)              # (H*TB, S, S)
    s = s - jnp.max(s, axis=-1, keepdims=True)                      # stable softmax (f32)
    p = jnp.exp(s)
    p = p * pl.reciprocal(jnp.sum(p, axis=-1, keepdims=True), approx=True)
    ctx = jnp.einsum("bqk,bkd->bqd", p.astype(MATMUL_DTYPE), v_h,
                     preferred_element_type=jnp.float32)            # (H*TB, S, hd)

    attn = jnp.concatenate([ctx[h * TB:(h + 1) * TB] for h in range(H)],
                           axis=-1)                                 # (TB, S, E)
    attn = _mm(attn.reshape(M, E), wo_ref[...]) + bo_ref[...]

    x1 = _layernorm(x + attn, ln1w_ref[...], ln1b_ref[...])

    # ---- feed forward (exact GELU, 4E hidden) ----
    h1 = _gelu_exact(_mm(x1, w1_ref[...]) + b1_ref[...])
    ff = _mm(h1, w2_ref[...]) + b2_ref[...]

    out = _layernorm(x1 + ff, ln2w_ref[...], ln2b_ref[...])
    o_ref[...] = out.reshape(TB, S, E)


# ------------------------------ JAX wrapper --------------------------------

def _pick_batch_block(batch, seq, target_rows=512):
    """Choose TB so every matmul has M = TB*seq rows (MXU util + weight reuse)."""
    if seq % 8 != 0:
        # keep the in-kernel (TB, S, .) <-> (TB*S, .) reshapes layout-trivial
        return 1
    tb = max(1, min(batch, max(1, target_rows // seq)))
    while batch % tb:
        tb -= 1
    # v7x megacore: prefer >= 2 batch blocks when it doesn't shrink M below ~128
    if batch // tb < 2:
        for cand in range(tb - 1, 0, -1):
            if batch % cand == 0 and batch // cand >= 2 and cand * seq >= min(128, tb * seq):
                tb = cand
                break
    return tb


@functools.lru_cache(maxsize=None)
def _vmem_limit_bytes():
    # Use most of the physical VMEM (128 MiB v5e/v6e, 64 MiB per core on v7x)
    # instead of the 16-32 MiB scoped default; safe fallback if the query fails.
    try:
        cap = pltpu.get_tpu_info().vmem_capacity_bytes
        return min(cap * 3 // 4, 100 * 1024 * 1024)
    except Exception:
        return 64 * 1024 * 1024


@functools.partial(jax.jit, static_argnames=("num_heads",))
def neuro_encoder_forward(x, params, *, num_heads):
    B, S, input_dim = x.shape
    E = params["proj_w_t"].shape[1]
    L = params["wqkv_t"].shape[0]
    assert E % num_heads == 0
    assert S <= params["pos"].shape[1], "seq_len exceeds positional table (5000)"

    TB = _pick_batch_block(B, S)
    M = TB * S

    # positional encoding pre-tiled to the batch block's row layout (M, E)
    pos_tiled = jnp.tile(params["pos"][0, :S, :], (TB, 1))

    kernel = functools.partial(fused_encoder_kernel, num_heads=num_heads)

    def fixed(a):      # replicated across the whole grid
        nd = a.ndim
        return pl.BlockSpec(a.shape, lambda b, l, _n=nd: (0,) * _n)

    def per_layer(a):  # leading layer axis squeezed away; one layer per grid step
        nd = a.ndim
        return pl.BlockSpec((pl.Squeezed(),) + a.shape[1:],
                            lambda b, l, _n=nd: (l,) + (0,) * (_n - 1))

    args = (
        x, pos_tiled, params["proj_w_t"], params["proj_b"],
        params["wqkv_t"], params["bqkv"], params["wo_t"], params["bo"],
        params["w1_t"], params["b1"], params["w2_t"], params["b2"],
        params["ln1w"], params["ln1b"], params["ln2w"], params["ln2b"],
    )
    in_specs = (
        [pl.BlockSpec((TB, S, input_dim), lambda b, l: (b, 0, 0)),
         fixed(pos_tiled), fixed(params["proj_w_t"]), fixed(params["proj_b"])]
        + [per_layer(a) for a in args[4:]]
    )

    return pl.pallas_call(
        kernel,
        out_shape=jax.ShapeDtypeStruct((B, S, E), jnp.float32),
        grid=(B // TB, L),
        in_specs=in_specs,
        out_specs=pl.BlockSpec((TB, S, E), lambda b, l: (b, 0, 0)),
        compiler_params=pltpu.CompilerParams(
            dimension_semantics=("parallel", "arbitrary"),
            vmem_limit_bytes=_vmem_limit_bytes()),
    )(*args)


# --------------------------- deterministic init -----------------------------

def init_params(key, input_dim, embed_dim, num_heads, num_layers, max_len=5000):
    E, L = embed_dim, num_layers
    hd = E // num_heads
    ks = jax.random.split(key, 5)

    def rnd(k, shape, scale=0.02):
        return (scale * jax.random.normal(k, shape)).astype(MATMUL_DTYPE)

    # Fold the 1/sqrt(head_dim) attention scale into the Q projection weights
    # (and bias) so the kernel never scales the (H, S, S) score tensor.
    scale = 1.0 / math.sqrt(hd)
    wqkv_t = rnd(ks[1], (L, E, 3 * E))
    wqkv_t = wqkv_t.at[:, :, :E].multiply(scale)
    bqkv = jnp.zeros((L, 1, 3 * E), jnp.float32)
    bqkv = bqkv.at[:, :, :E].multiply(scale)

    return {
        # nn.Linear(input_dim, E): weight (E, input_dim) -> stored transposed
        "proj_w_t": rnd(ks[0], (input_dim, E)),
        "proj_b": jnp.zeros((1, E), jnp.float32),
        # nn.Parameter(torch.zeros(1, 5000, E))
        "pos": jnp.zeros((1, max_len, E), jnp.float32),
        # per-layer weights stacked on a leading layer axis (streamed per grid step)
        "wqkv_t": wqkv_t,                               # MHA in_proj, transposed
        "bqkv": bqkv,
        "wo_t": rnd(ks[2], (L, E, E)),                  # MHA out_proj, transposed
        "bo": jnp.zeros((L, 1, E), jnp.float32),
        "w1_t": rnd(ks[3], (L, E, 4 * E)),              # linear1, transposed
        "b1": jnp.zeros((L, 1, 4 * E), jnp.float32),
        "w2_t": rnd(ks[4], (L, 4 * E, E)),              # linear2, transposed
        "b2": jnp.zeros((L, 1, E), jnp.float32),
        "ln1w": jnp.ones((L, 1, E), jnp.float32),
        "ln1b": jnp.zeros((L, 1, E), jnp.float32),
        "ln2w": jnp.ones((L, 1, E), jnp.float32),
        "ln2b": jnp.zeros((L, 1, E), jnp.float32),
    }


# ----------------------------------- main -----------------------------------

if __name__ == "__main__":
    # NOTE: demo shapes are intentionally tiny (E=32, hd=4, S=8); realistic
    # perf evaluation needs E and head_dim as multiples of 128.
    batch, seq, input_dim, embed_dim = 2, 8, 16, 32
    num_heads, num_layers = 8, 4

    key = jax.random.PRNGKey(0)
    kx, kp = jax.random.split(key)
    x = jax.random.normal(kx, (batch, seq, input_dim), dtype=jnp.float32)
    params = init_params(kp, input_dim, embed_dim, num_heads, num_layers)

    out = neuro_encoder_forward(x, params, num_heads=num_heads)
    out = jax.block_until_ready(out)
    assert out.shape == (batch, seq, embed_dim)
    assert jnp.isfinite(out).all()
    print("KERNEL_OK")
</pallas_src>

<mosaic_0001>
module attributes {stable_mosaic.version = 11 : i64} {
  func.func @fused_encoder_kernel(%arg0: i32, %arg1: i32, %arg2: memref<2x8x16xf32, #tpu.memory_space<vmem>>, %arg3: memref<16x32xf32, #tpu.memory_space<vmem>>, %arg4: memref<16x32xbf16, #tpu.memory_space<vmem>>, %arg5: memref<1x32xf32, #tpu.memory_space<vmem>>, %arg6: memref<1x32x96xbf16, #tpu.memory_space<vmem>>, %arg7: memref<1x1x96xf32, #tpu.memory_space<vmem>>, %arg8: memref<1x32x32xbf16, #tpu.memory_space<vmem>>, %arg9: memref<1x1x32xf32, #tpu.memory_space<vmem>>, %arg10: memref<1x32x128xbf16, #tpu.memory_space<vmem>>, %arg11: memref<1x1x128xf32, #tpu.memory_space<vmem>>, %arg12: memref<1x128x32xbf16, #tpu.memory_space<vmem>>, %arg13: memref<1x1x32xf32, #tpu.memory_space<vmem>>, %arg14: memref<1x1x32xf32, #tpu.memory_space<vmem>>, %arg15: memref<1x1x32xf32, #tpu.memory_space<vmem>>, %arg16: memref<1x1x32xf32, #tpu.memory_space<vmem>>, %arg17: memref<1x1x32xf32, #tpu.memory_space<vmem>>, %arg18: memref<2x8x32xf32, #tpu.memory_space<vmem>>) attributes {dimension_semantics = [#tpu.dimension_semantics<parallel>, #tpu.dimension_semantics<arbitrary>], iteration_bounds = array<i64: 1, 4>, scalar_prefetch = 0 : i64, scratch_operands = 0 : i64, tpu.core_type = #tpu.core_type<tc>, window_params = [{transform_indices = @transform_0, window_bounds = array<i64: 2, 8, 16>}, {pipeline_mode = #tpu.pipeline_mode<synchronous>, transform_indices = @transform_1, window_bounds = array<i64: 16, 32>}, {pipeline_mode = #tpu.pipeline_mode<synchronous>, transform_indices = @transform_2, window_bounds = array<i64: 16, 32>}, {pipeline_mode = #tpu.pipeline_mode<synchronous>, transform_indices = @transform_3, window_bounds = array<i64: 1, 32>}, {transform_indices = @transform_4, window_bounds = array<i64: 1, 32, 96>}, {transform_indices = @transform_5, window_bounds = array<i64: 1, 1, 96>}, {transform_indices = @transform_6, window_bounds = array<i64: 1, 32, 32>}, {transform_indices = @transform_7, window_bounds = array<i64: 1, 1, 32>}, {transform_indices = @transform_8, window_bounds = array<i64: 1, 32, 128>}, {transform_indices = @transform_9, window_bounds = array<i64: 1, 1, 128>}, {transform_indices = @transform_10, window_bounds = array<i64: 1, 128, 32>}, {transform_indices = @transform_11, window_bounds = array<i64: 1, 1, 32>}, {transform_indices = @transform_12, window_bounds = array<i64: 1, 1, 32>}, {transform_indices = @transform_13, window_bounds = array<i64: 1, 1, 32>}, {transform_indices = @transform_14, window_bounds = array<i64: 1, 1, 32>}, {transform_indices = @transform_15, window_bounds = array<i64: 1, 1, 32>}, {transform_indices = @transform_16, window_bounds = array<i64: 2, 8, 32>}]} {
    %c0_i32 = arith.constant 0 : i32
    %0 = arith.cmpi eq, %arg1, %c0_i32 : i32
    %1 = arith.extui %0 : i1 to i32
    %c0_i32_0 = arith.constant 0 : i32
    %2 = arith.cmpi ne, %1, %c0_i32_0 : i32
    scf.if %2 {
      %c0_62 = arith.constant 0 : index
      %c0_63 = arith.constant 0 : index
      %c0_64 = arith.constant 0 : index
      %153 = vector.load %arg2[%c0_62, %c0_63, %c0_64] : memref<2x8x16xf32, #tpu.memory_space<vmem>>, vector<2x8x16xf32>
      %154 = vector.shape_cast %153 : vector<2x8x16xf32> to vector<16x16xf32>
      %c0_65 = arith.constant 0 : index
      %c0_66 = arith.constant 0 : index
      %155 = vector.load %arg4[%c0_65, %c0_66] : memref<16x32xbf16, #tpu.memory_space<vmem>>, vector<16x32xbf16>
      %156 = arith.truncf %154 : vector<16x16xf32> to vector<16x16xbf16>
      %cst_67 = arith.constant dense<0.000000e+00> : vector<16x32xf32>
      %157 = tpu.matmul %156, %155, %cst_67 {dimension_numbers = #tpu.dot_dimension_numbers<[1], [0], [0], [1], [0, 0, 1, 1], [], []>} : vector<16x16xbf16>, vector<16x32xbf16>, vector<16x32xf32> -> vector<16x32xf32>
      %c0_68 = arith.constant 0 : index
      %c0_69 = arith.constant 0 : index
      %158 = vector.load %arg5[%c0_68, %c0_69] : memref<1x32xf32, #tpu.memory_space<vmem>>, vector<1x32xf32>
      %159 = vector.broadcast %158 : vector<1x32xf32> to vector<16x32xf32>
      %160 = arith.addf %157, %159 : vector<16x32xf32>
      %c0_70 = arith.constant 0 : index
      %c0_71 = arith.constant 0 : index
      %161 = vector.load %arg3[%c0_70, %c0_71] : memref<16x32xf32, #tpu.memory_space<vmem>>, vector<16x32xf32>
      %162 = arith.addf %160, %161 : vector<16x32xf32>
      %163 = vector.shape_cast %162 : vector<16x32xf32> to vector<2x8x32xf32>
      %c0_72 = arith.constant 0 : index
      %c0_73 = arith.constant 0 : index
      %c0_74 = arith.constant 0 : index
      %164 = vector.load %arg18[%c0_72, %c0_73, %c0_74] : memref<2x8x32xf32, #tpu.memory_space<vmem>>, vector<2x8x32xf32>
      tpu.vector_store %arg18[%c0_72, %c0_73, %c0_74], %163 {strides = array<i32>} : memref<2x8x32xf32, #tpu.memory_space<vmem>>, vector<2x8x32xf32>,
    } else {
    }
    %c0 = arith.constant 0 : index
    %c0_1 = arith.constant 0 : index
    %c0_2 = arith.constant 0 : index
    %3 = vector.load %arg18[%c0, %c0_1, %c0_2] : memref<2x8x32xf32, #tpu.memory_space<vmem>>, vector<2x8x32xf32>
    %4 = vector.shape_cast %3 : vector<2x8x32xf32> to vector<16x32xf32>
    %c0_3 = arith.constant 0 : index
    %c0_4 = arith.constant 0 : index
    %c0_5 = arith.constant 0 : index
    %5 = vector.load %arg6[%c0_3, %c0_4, %c0_5] : memref<1x32x96xbf16, #tpu.memory_space<vmem>>, vector<1x32x96xbf16>
    %6 = vector.shape_cast %5 : vector<1x32x96xbf16> to vector<32x96xbf16>
    %7 = arith.truncf %4 : vector<16x32xf32> to vector<16x32xbf16>
    %cst = arith.constant dense<0.000000e+00> : vector<16x96xf32>
    %8 = tpu.matmul %7, %6, %cst {dimension_numbers = #tpu.dot_dimension_numbers<[1], [0], [0], [1], [0, 0, 1, 1], [], []>} : vector<16x32xbf16>, vector<32x96xbf16>, vector<16x96xf32> -> vector<16x96xf32>
    %c0_6 = arith.constant 0 : index
    %c0_7 = arith.constant 0 : index
    %c0_8 = arith.constant 0 : index
    %9 = vector.load %arg7[%c0_6, %c0_7, %c0_8] : memref<1x1x96xf32, #tpu.memory_space<vmem>>, vector<1x1x96xf32>
    %10 = vector.shape_cast %9 : vector<1x1x96xf32> to vector<1x96xf32>
    %11 = vector.broadcast %10 : vector<1x96xf32> to vector<16x96xf32>
    %12 = arith.addf %8, %11 : vector<16x96xf32>
    %13 = arith.truncf %12 : vector<16x96xf32> to vector<16x96xbf16>
    %14 = vector.shape_cast %13 : vector<16x96xbf16> to vector<2x8x96xbf16>
    %15 = vector.extract_strided_slice %14 {offsets = [0, 0, 0], sizes = [2, 8, 4], strides = [1, 1, 1]} : vector<2x8x96xbf16> to vector<2x8x4xbf16>
    %16 = vector.extract_strided_slice %14 {offsets = [0, 0, 4], sizes = [2, 8, 4], strides = [1, 1, 1]} : vector<2x8x96xbf16> to vector<2x8x4xbf16>
    %17 = vector.extract_strided_slice %14 {offsets = [0, 0, 8], sizes = [2, 8, 4], strides = [1, 1, 1]} : vector<2x8x96xbf16> to vector<2x8x4xbf16>
    %18 = vector.extract_strided_slice %14 {offsets = [0, 0, 12], sizes = [2, 8, 4], strides = [1, 1, 1]} : vector<2x8x96xbf16> to vector<2x8x4xbf16>
    %19 = vector.extract_strided_slice %14 {offsets = [0, 0, 16], sizes = [2, 8, 4], strides = [1, 1, 1]} : vector<2x8x96xbf16> to vector<2x8x4xbf16>
    %20 = vector.extract_strided_slice %14 {offsets = [0, 0, 20], sizes = [2, 8, 4], strides = [1, 1, 1]} : vector<2x8x96xbf16> to vector<2x8x4xbf16>
    %21 = vector.extract_strided_slice %14 {offsets = [0, 0, 24], sizes = [2, 8, 4], strides = [1, 1, 1]} : vector<2x8x96xbf16> to vector<2x8x4xbf16>
    %22 = vector.extract_strided_slice %14 {offsets = [0, 0, 28], sizes = [2, 8, 4], strides = [1, 1, 1]} : vector<2x8x96xbf16> to vector<2x8x4xbf16>
    %23 = tpu.concatenate %15, %16, %17, %18, %19, %20, %21, %22 in 0 : vector<2x8x4xbf16>, vector<2x8x4xbf16>, vector<2x8x4xbf16>, vector<2x8x4xbf16>, vector<2x8x4xbf16>, vector<2x8x4xbf16>, vector<2x8x4xbf16>, vector<2x8x4xbf16> -> vector<16x8x4xbf16>
    %24 = vector.extract_strided_slice %14 {offsets = [0, 0, 32], sizes = [2, 8, 4], strides = [1, 1, 1]} : vector<2x8x96xbf16> to vector<2x8x4xbf16>
    %25 = vector.extract_strided_slice %14 {offsets = [0, 0, 36], sizes = [2, 8, 4], strides = [1, 1, 1]} : vector<2x8x96xbf16> to vector<2x8x4xbf16>
    %26 = vector.extract_strided_slice %14 {offsets = [0, 0, 40], sizes = [2, 8, 4], strides = [1, 1, 1]} : vector<2x8x96xbf16> to vector<2x8x4xbf16>
    %27 = vector.extract_strided_slice %14 {offsets = [0, 0, 44], sizes = [2, 8, 4], strides = [1, 1, 1]} : vector<2x8x96xbf16> to vector<2x8x4xbf16>
    %28 = vector.extract_strided_slice %14 {offsets = [0, 0, 48], sizes = [2, 8, 4], strides = [1, 1, 1]} : vector<2x8x96xbf16> to vector<2x8x4xbf16>
    %29 = vector.extract_strided_slice %14 {offsets = [0, 0, 52], sizes = [2, 8, 4], strides = [1, 1, 1]} : vector<2x8x96xbf16> to vector<2x8x4xbf16>
    %30 = vector.extract_strided_slice %14 {offsets = [0, 0, 56], sizes = [2, 8, 4], strides = [1, 1, 1]} : vector<2x8x96xbf16> to vector<2x8x4xbf16>
    %31 = vector.extract_strided_slice %14 {offsets = [0, 0, 60], sizes = [2, 8, 4], strides = [1, 1, 1]} : vector<2x8x96xbf16> to vector<2x8x4xbf16>
    %32 = tpu.concatenate %24, %25, %26, %27, %28, %29, %30, %31 in 0 : vector<2x8x4xbf16>, vector<2x8x4xbf16>, vector<2x8x4xbf16>, vector<2x8x4xbf16>, vector<2x8x4xbf16>, vector<2x8x4xbf16>, vector<2x8x4xbf16>, vector<2x8x4xbf16> -> vector<16x8x4xbf16>
    %33 = vector.extract_strided_slice %14 {offsets = [0, 0, 64], sizes = [2, 8, 4], strides = [1, 1, 1]} : vector<2x8x96xbf16> to vector<2x8x4xbf16>
    %34 = vector.extract_strided_slice %14 {offsets = [0, 0, 68], sizes = [2, 8, 4], strides = [1, 1, 1]} : vector<2x8x96xbf16> to vector<2x8x4xbf16>
    %35 = vector.extract_strided_slice %14 {offsets = [0, 0, 72], sizes = [2, 8, 4], strides = [1, 1, 1]} : vector<2x8x96xbf16> to vector<2x8x4xbf16>
    %36 = vector.extract_strided_slice %14 {offsets = [0, 0, 76], sizes = [2, 8, 4], strides = [1, 1, 1]} : vector<2x8x96xbf16> to vector<2x8x4xbf16>
    %37 = vector.extract_strided_slice %14 {offsets = [0, 0, 80], sizes = [2, 8, 4], strides = [1, 1, 1]} : vector<2x8x96xbf16> to vector<2x8x4xbf16>
    %38 = vector.extract_strided_slice %14 {offsets = [0, 0, 84], sizes = [2, 8, 4], strides = [1, 1, 1]} : vector<2x8x96xbf16> to vector<2x8x4xbf16>
    %39 = vector.extract_strided_slice %14 {offsets = [0, 0, 88], sizes = [2, 8, 4], strides = [1, 1, 1]} : vector<2x8x96xbf16> to vector<2x8x4xbf16>
    %40 = vector.extract_strided_slice %14 {offsets = [0, 0, 92], sizes = [2, 8, 4], strides = [1, 1, 1]} : vector<2x8x96xbf16> to vector<2x8x4xbf16>
    %41 = tpu.concatenate %33, %34, %35, %36, %37, %38, %39, %40 in 0 : vector<2x8x4xbf16>, vector<2x8x4xbf16>, vector<2x8x4xbf16>, vector<2x8x4xbf16>, vector<2x8x4xbf16>, vector<2x8x4xbf16>, vector<2x8x4xbf16>, vector<2x8x4xbf16> -> vector<16x8x4xbf16>
    "tpu.trace_start"() <{level = 10 : i32, message = "bqd,bkd->bqk"}> : () -> ()
    %cst_9 = arith.constant dense<0.000000e+00> : vector<16x8x8xf32>
    %42 = tpu.matmul %23, %32, %cst_9 {dimension_numbers = #tpu.dot_dimension_numbers<[2], [2], [1], [1], [0, 0, 0, 1, 1, 1], [0], [0]>} : vector<16x8x4xbf16>, vector<16x8x4xbf16>, vector<16x8x8xf32> -> vector<16x8x8xf32>
    "tpu.trace_stop"() : () -> ()
    %cst_10 = arith.constant dense<0xFF800000> : vector<16x8xf32>
    %43 = vector.multi_reduction <maximumf>, %42, %cst_10 [2] : vector<16x8x8xf32> to vector<16x8xf32>
    %44 = vector.shape_cast %43 : vector<16x8xf32> to vector<16x8x1xf32>
    %45 = vector.broadcast %44 : vector<16x8x1xf32> to vector<16x8x8xf32>
    %46 = arith.subf %42, %45 : vector<16x8x8xf32>
    %47 = math.exp %46 : vector<16x8x8xf32>
    %cst_11 = arith.constant dense<0.000000e+00> : vector<16x8xf32>
    %48 = vector.multi_reduction <add>, %47, %cst_11 [2] : vector<16x8x8xf32> to vector<16x8xf32>
    %49 = vector.shape_cast %48 : vector<16x8xf32> to vector<16x8x1xf32>
    %50 = tpu.reciprocal %49 {approx = true} : vector<16x8x1xf32> -> vector<16x8x1xf32>
    %51 = vector.broadcast %50 : vector<16x8x1xf32> to vector<16x8x8xf32>
    %52 = arith.mulf %47, %51 : vector<16x8x8xf32>
    %53 = arith.truncf %52 : vector<16x8x8xf32> to vector<16x8x8xbf16>
    "tpu.trace_start"() <{level = 10 : i32, message = "bqk,bkd->bqd"}> : () -> ()
    %cst_12 = arith.constant dense<0.000000e+00> : vector<16x8x4xf32>
    %54 = tpu.matmul %53, %41, %cst_12 {dimension_numbers = #tpu.dot_dimension_numbers<[2], [1], [1], [2], [0, 0, 0, 1, 1, 2], [0], [0]>} : vector<16x8x8xbf16>, vector<16x8x4xbf16>, vector<16x8x4xf32> -> vector<16x8x4xf32>
    "tpu.trace_stop"() : () -> ()
    %55 = vector.extract_strided_slice %54 {offsets = [0, 0, 0], sizes = [2, 8, 4], strides = [1, 1, 1]} : vector<16x8x4xf32> to vector<2x8x4xf32>
    %56 = vector.extract_strided_slice %54 {offsets = [2, 0, 0], sizes = [2, 8, 4], strides = [1, 1, 1]} : vector<16x8x4xf32> to vector<2x8x4xf32>
    %57 = vector.extract_strided_slice %54 {offsets = [4, 0, 0], sizes = [2, 8, 4], strides = [1, 1, 1]} : vector<16x8x4xf32> to vector<2x8x4xf32>
    %58 = vector.extract_strided_slice %54 {offsets = [6, 0, 0], sizes = [2, 8, 4], strides = [1, 1, 1]} : vector<16x8x4xf32> to vector<2x8x4xf32>
    %59 = vector.extract_strided_slice %54 {offsets = [8, 0, 0], sizes = [2, 8, 4], strides = [1, 1, 1]} : vector<16x8x4xf32> to vector<2x8x4xf32>
    %60 = vector.extract_strided_slice %54 {offsets = [10, 0, 0], sizes = [2, 8, 4], strides = [1, 1, 1]} : vector<16x8x4xf32> to vector<2x8x4xf32>
    %61 = vector.extract_strided_slice %54 {offsets = [12, 0, 0], sizes = [2, 8, 4], strides = [1, 1, 1]} : vector<16x8x4xf32> to vector<2x8x4xf32>
    %62 = vector.extract_strided_slice %54 {offsets = [14, 0, 0], sizes = [2, 8, 4], strides = [1, 1, 1]} : vector<16x8x4xf32> to vector<2x8x4xf32>
    %63 = tpu.concatenate %55, %56, %57, %58, %59, %60, %61, %62 in 2 : vector<2x8x4xf32>, vector<2x8x4xf32>, vector<2x8x4xf32>, vector<2x8x4xf32>, vector<2x8x4xf32>, vector<2x8x4xf32>, vector<2x8x4xf32>, vector<2x8x4xf32> -> vector<2x8x32xf32>
    %64 = vector.shape_cast %63 : vector<2x8x32xf32> to vector<16x32xf32>
    %c0_13 = arith.constant 0 : index
    %c0_14 = arith.constant 0 : index
    %c0_15 = arith.constant 0 : index
    %65 = vector.load %arg8[%c0_13, %c0_14, %c0_15] : memref<1x32x32xbf16, #tpu.memory_space<vmem>>, vector<1x32x32xbf16>
    %66 = vector.shape_cast %65 : vector<1x32x32xbf16> to vector<32x32xbf16>
    %67 = arith.truncf %64 : vector<16x32xf32> to vector<16x32xbf16>
    %cst_16 = arith.constant dense<0.000000e+00> : vector<16x32xf32>
    %68 = tpu.matmul %67, %66, %cst_16 {dimension_numbers = #tpu.dot_dimension_numbers<[1], [0], [0], [1], [0, 0, 1, 1], [], []>} : vector<16x32xbf16>, vector<32x32xbf16>, vector<16x32xf32> -> vector<16x32xf32>
    %c0_17 = arith.constant 0 : index
    %c0_18 = arith.constant 0 : index
    %c0_19 = arith.constant 0 : index
    %69 = vector.load %arg9[%c0_17, %c0_18, %c0_19] : memref<1x1x32xf32, #tpu.memory_space<vmem>>, vector<1x1x32xf32>
    %70 = vector.shape_cast %69 : vector<1x1x32xf32> to vector<1x32xf32>
    %71 = vector.broadcast %70 : vector<1x32xf32> to vector<16x32xf32>
    %72 = arith.addf %68, %71 : vector<16x32xf32>
    %73 = arith.addf %4, %72 : vector<16x32xf32>
    %c0_20 = arith.constant 0 : index
    %c0_21 = arith.constant 0 : index
    %c0_22 = arith.constant 0 : index
    %74 = vector.load %arg14[%c0_20, %c0_21, %c0_22] : memref<1x1x32xf32, #tpu.memory_space<vmem>>, vector<1x1x32xf32>
    %75 = vector.shape_cast %74 : vector<1x1x32xf32> to vector<1x32xf32>
    %c0_23 = arith.constant 0 : index
    %c0_24 = arith.constant 0 : index
    %c0_25 = arith.constant 0 : index
    %76 = vector.load %arg15[%c0_23, %c0_24, %c0_25] : memref<1x1x32xf32, #tpu.memory_space<vmem>>, vector<1x1x32xf32>
    %77 = vector.shape_cast %76 : vector<1x1x32xf32> to vector<1x32xf32>
    %cst_26 = arith.constant dense<0.000000e+00> : vector<16xf32>
    %78 = vector.multi_reduction <add>, %73, %cst_26 [1] : vector<16x32xf32> to vector<16xf32>
    %79 = vector.shape_cast %78 : vector<16xf32> to vector<16x1xf32>
    %cst_27 = arith.constant 3.200000e+01 : f32
    %80 = vector.broadcast %cst_27 : f32 to vector<16x1xf32>
    %81 = arith.divf %79, %80 : vector<16x1xf32>
    %82 = vector.broadcast %81 : vector<16x1xf32> to vector<16x32xf32>
    %83 = arith.subf %73, %82 : vector<16x32xf32>
    %84 = arith.mulf %83, %83 : vector<16x32xf32>
    %cst_28 = arith.constant dense<0.000000e+00> : vector<16xf32>
    %85 = vector.multi_reduction <add>, %84, %cst_28 [1] : vector<16x32xf32> to vector<16xf32>
    %86 = vector.shape_cast %85 : vector<16xf32> to vector<16x1xf32>
    %cst_29 = arith.constant 3.200000e+01 : f32
    %87 = vector.broadcast %cst_29 : f32 to vector<16x1xf32>
    %88 = arith.divf %86, %87 : vector<16x1xf32>
    %89 = vector.broadcast %81 : vector<16x1xf32> to vector<16x32xf32>
    %90 = arith.subf %73, %89 : vector<16x32xf32>
    %cst_30 = arith.constant 9.99999974E-6 : f32
    %91 = vector.broadcast %cst_30 : f32 to vector<16x1xf32>
    %92 = arith.addf %88, %91 : vector<16x1xf32>
    %93 = math.rsqrt %92 : vector<16x1xf32>
    %94 = vector.broadcast %93 : vector<16x1xf32> to vector<16x32xf32>
    %95 = arith.mulf %90, %94 : vector<16x32xf32>
    %96 = vector.broadcast %75 : vector<1x32xf32> to vector<16x32xf32>
    %97 = arith.mulf %95, %96 : vector<16x32xf32>
    %98 = vector.broadcast %77 : vector<1x32xf32> to vector<16x32xf32>
    %99 = arith.addf %97, %98 : vector<16x32xf32>
    %c0_31 = arith.constant 0 : index
    %c0_32 = arith.constant 0 : index
    %c0_33 = arith.constant 0 : index
    %100 = vector.load %arg10[%c0_31, %c0_32, %c0_33] : memref<1x32x128xbf16, #tpu.memory_space<vmem>>, vector<1x32x128xbf16>
    %101 = vector.shape_cast %100 : vector<1x32x128xbf16> to vector<32x128xbf16>
    %102 = arith.truncf %99 : vector<16x32xf32> to vector<16x32xbf16>
    %cst_34 = arith.constant dense<0.000000e+00> : vector<16x128xf32>
    %103 = tpu.matmul %102, %101, %cst_34 {dimension_numbers = #tpu.dot_dimension_numbers<[1], [0], [0], [1], [0, 0, 1, 1], [], []>} : vector<16x32xbf16>, vector<32x128xbf16>, vector<16x128xf32> -> vector<16x128xf32>
    %c0_35 = arith.constant 0 : index
    %c0_36 = arith.constant 0 : index
    %c0_37 = arith.constant 0 : index
    %104 = vector.load %arg11[%c0_35, %c0_36, %c0_37] : memref<1x1x128xf32, #tpu.memory_space<vmem>>, vector<1x1x128xf32>
    %105 = vector.shape_cast %104 : vector<1x1x128xf32> to vector<1x128xf32>
    %106 = vector.broadcast %105 : vector<1x128xf32> to vector<16x128xf32>
    %107 = arith.addf %103, %106 : vector<16x128xf32>
    %cst_38 = arith.constant 5.000000e-01 : f32
    %108 = vector.broadcast %cst_38 : f32 to vector<16x128xf32>
    %109 = arith.mulf %108, %107 : vector<16x128xf32>
    %cst_39 = arith.constant 0.707106769 : f32
    %110 = vector.broadcast %cst_39 : f32 to vector<16x128xf32>
    %111 = arith.mulf %107, %110 : vector<16x128xf32>
    %112 = math.erf %111 : vector<16x128xf32>
    %cst_40 = arith.constant 1.000000e+00 : f32
    %113 = vector.broadcast %cst_40 : f32 to vector<16x128xf32>
    %114 = arith.addf %113, %112 : vector<16x128xf32>
    %115 = arith.mulf %109, %114 : vector<16x128xf32>
    %c0_41 = arith.constant 0 : index
    %c0_42 = arith.constant 0 : index
    %c0_43 = arith.constant 0 : index
    %116 = vector.load %arg12[%c0_41, %c0_42, %c0_43] : memref<1x128x32xbf16, #tpu.memory_space<vmem>>, vector<1x128x32xbf16>
    %117 = vector.shape_cast %116 : vector<1x128x32xbf16> to vector<128x32xbf16>
    %118 = arith.truncf %115 : vector<16x128xf32> to vector<16x128xbf16>
    %cst_44 = arith.constant dense<0.000000e+00> : vector<16x32xf32>
    %119 = tpu.matmul %118, %117, %cst_44 {dimension_numbers = #tpu.dot_dimension_numbers<[1], [0], [0], [1], [0, 0, 1, 1], [], []>} : vector<16x128xbf16>, vector<128x32xbf16>, vector<16x32xf32> -> vector<16x32xf32>
    %c0_45 = arith.constant 0 : index
    %c0_46 = arith.constant 0 : index
    %c0_47 = arith.constant 0 : index
    %120 = vector.load %arg13[%c0_45, %c0_46, %c0_47] : memref<1x1x32xf32, #tpu.memory_space<vmem>>, vector<1x1x32xf32>
    %121 = vector.shape_cast %120 : vector<1x1x32xf32> to vector<1x32xf32>
    %122 = vector.broadcast %121 : vector<1x32xf32> to vector<16x32xf32>
    %123 = arith.addf %119, %122 : vector<16x32xf32>
    %124 = arith.addf %99, %123 : vector<16x32xf32>
    %c0_48 = arith.constant 0 : index
    %c0_49 = arith.constant 0 : index
    %c0_50 = arith.constant 0 : index
    %125 = vector.load %arg16[%c0_48, %c0_49, %c0_50] : memref<1x1x32xf32, #tpu.memory_space<vmem>>, vector<1x1x32xf32>
    %126 = vector.shape_cast %125 : vector<1x1x32xf32> to vector<1x32xf32>
    %c0_51 = arith.constant 0 : index
    %c0_52 = arith.constant 0 : index
    %c0_53 = arith.constant 0 : index
    %127 = vector.load %arg17[%c0_51, %c0_52, %c0_53] : memref<1x1x32xf32, #tpu.memory_space<vmem>>, vector<1x1x32xf32>
    %128 = vector.shape_cast %127 : vector<1x1x32xf32> to vector<1x32xf32>
    %cst_54 = arith.constant dense<0.000000e+00> : vector<16xf32>
    %129 = vector.multi_reduction <add>, %124, %cst_54 [1] : vector<16x32xf32> to vector<16xf32>
    %130 = vector.shape_cast %129 : vector<16xf32> to vector<16x1xf32>
    %cst_55 = arith.constant 3.200000e+01 : f32
    %131 = vector.broadcast %cst_55 : f32 to vector<16x1xf32>
    %132 = arith.divf %130, %131 : vector<16x1xf32>
    %133 = vector.broadcast %132 : vector<16x1xf32> to vector<16x32xf32>
    %134 = arith.subf %124, %133 : vector<16x32xf32>
    %135 = arith.mulf %134, %134 : vector<16x32xf32>
    %cst_56 = arith.constant dense<0.000000e+00> : vector<16xf32>
    %136 = vector.multi_reduction <add>, %135, %cst_56 [1] : vector<16x32xf32> to vector<16xf32>
    %137 = vector.shape_cast %136 : vector<16xf32> to vector<16x1xf32>
    %cst_57 = arith.constant 3.200000e+01 : f32
    %138 = vector.broadcast %cst_57 : f32 to vector<16x1xf32>
    %139 = arith.divf %137, %138 : vector<16x1xf32>
    %140 = vector.broadcast %132 : vector<16x1xf32> to vector<16x32xf32>
    %141 = arith.subf %124, %140 : vector<16x32xf32>
    %cst_58 = arith.constant 9.99999974E-6 : f32
    %142 = vector.broadcast %cst_58 : f32 to vector<16x1xf32>
    %143 = arith.addf %139, %142 : vector<16x1xf32>
    %144 = math.rsqrt %143 : vector<16x1xf32>
    %145 = vector.broadcast %144 : vector<16x1xf32> to vector<16x32xf32>
    %146 = arith.mulf %141, %145 : vector<16x32xf32>
    %147 = vector.broadcast %126 : vector<1x32xf32> to vector<16x32xf32>
    %148 = arith.mulf %146, %147 : vector<16x32xf32>
    %149 = vector.broadcast %128 : vector<1x32xf32> to vector<16x32xf32>
    %150 = arith.addf %148, %149 : vector<16x32xf32>
    %151 = vector.shape_cast %150 : vector<16x32xf32> to vector<2x8x32xf32>
    %c0_59 = arith.constant 0 : index
    %c0_60 = arith.constant 0 : index
    %c0_61 = arith.constant 0 : index
    %152 = vector.load %arg18[%c0_59, %c0_60, %c0_61] : memref<2x8x32xf32, #tpu.memory_space<vmem>>, vector<2x8x32xf32>
    tpu.vector_store %arg18[%c0_59, %c0_60, %c0_61], %151 {strides = array<i32>} : memref<2x8x32xf32, #tpu.memory_space<vmem>>, vector<2x8x32xf32>,
    return
  }
  func.func @transform_0(%arg0: i32, %arg1: i32) -> (i32, i32, i32) {
    %c0_i32 = arith.constant 0 : i32
    %c0_i32_0 = arith.constant 0 : i32
    %c0_i32_1 = arith.constant 0 : i32
    return %arg0, %c0_i32, %c0_i32_0 : i32, i32, i32
  }
  func.func @transform_1(%arg0: i32, %arg1: i32) -> (i32, i32) {
    %c0_i32 = arith.constant 0 : i32
    %c0_i32_0 = arith.constant 0 : i32
    %c0_i32_1 = arith.constant 0 : i32
    return %c0_i32, %c0_i32_0 : i32, i32
  }
  func.func @transform_2(%arg0: i32, %arg1: i32) -> (i32, i32) {
    %c0_i32 = arith.constant 0 : i32
    %c0_i32_0 = arith.constant 0 : i32
    %c0_i32_1 = arith.constant 0 : i32
    return %c0_i32, %c0_i32_0 : i32, i32
  }
  func.func @transform_3(%arg0: i32, %arg1: i32) -> (i32, i32) {
    %c0_i32 = arith.constant 0 : i32
    %c0_i32_0 = arith.constant 0 : i32
    %c0_i32_1 = arith.constant 0 : i32
    return %c0_i32, %c0_i32_0 : i32, i32
  }
  func.func @transform_4(%arg0: i32, %arg1: i32) -> (i32, i32, i32) {
    %c0_i32 = arith.constant 0 : i32
    %c0_i32_0 = arith.constant 0 : i32
    %c0_i32_1 = arith.constant 0 : i32
    return %arg1, %c0_i32, %c0_i32_0 : i32, i32, i32
  }
  func.func @transform_5(%arg0: i32, %arg1: i32) -> (i32, i32, i32) {
    %c0_i32 = arith.constant 0 : i32
    %c0_i32_0 = arith.constant 0 : i32
    %c0_i32_1 = arith.constant 0 : i32
    return %arg1, %c0_i32, %c0_i32_0 : i32, i32, i32
  }
  func.func @transform_6(%arg0: i32, %arg1: i32) -> (i32, i32, i32) {
    %c0_i32 = arith.constant 0 : i32
    %c0_i32_0 = arith.constant 0 : i32
    %c0_i32_1 = arith.constant 0 : i32
    return %arg1, %c0_i32, %c0_i32_0 : i32, i32, i32
  }
  func.func @transform_7(%arg0: i32, %arg1: i32) -> (i32, i32, i32) {
    %c0_i32 = arith.constant 0 : i32
    %c0_i32_0 = arith.constant 0 : i32
    %c0_i32_1 = arith.constant 0 : i32
    return %arg1, %c0_i32, %c0_i32_0 : i32, i32, i32
  }
  func.func @transform_8(%arg0: i32, %arg1: i32) -> (i32, i32, i32) {
    %c0_i32 = arith.constant 0 : i32
    %c0_i32_0 = arith.constant 0 : i32
    %c0_i32_1 = arith.constant 0 : i32
    return %arg1, %c0_i32, %c0_i32_0 : i32, i32, i32
  }
  func.func @transform_9(%arg0: i32, %arg1: i32) -> (i32, i32, i32) {
    %c0_i32 = arith.constant 0 : i32
    %c0_i32_0 = arith.constant 0 : i32
    %c0_i32_1 = arith.constant 0 : i32
    return %arg1, %c0_i32, %c0_i32_0 : i32, i32, i32
  }
  func.func @transform_10(%arg0: i32, %arg1: i32) -> (i32, i32, i32) {
    %c0_i32 = arith.constant 0 : i32
    %c0_i32_0 = arith.constant 0 : i32
    %c0_i32_1 = arith.constant 0 : i32
    return %arg1, %c0_i32, %c0_i32_0 : i32, i32, i32
  }
  func.func @transform_11(%arg0: i32, %arg1: i32) -> (i32, i32, i32) {
    %c0_i32 = arith.constant 0 : i32
    %c0_i32_0 = arith.constant 0 : i32
    %c0_i32_1 = arith.constant 0 : i32
    return %arg1, %c0_i32, %c0_i32_0 : i32, i32, i32
  }
  func.func @transform_12(%arg0: i32, %arg1: i32) -> (i32, i32, i32) {
    %c0_i32 = arith.constant 0 : i32
    %c0_i32_0 = arith.constant 0 : i32
    %c0_i32_1 = arith.constant 0 : i32
    return %arg1, %c0_i32, %c0_i32_0 : i32, i32, i32
  }
  func.func @transform_13(%arg0: i32, %arg1: i32) -> (i32, i32, i32) {
    %c0_i32 = arith.constant 0 : i32
    %c0_i32_0 = arith.constant 0 : i32
    %c0_i32_1 = arith.constant 0 : i32
    return %arg1, %c0_i32, %c0_i32_0 : i32, i32, i32
  }
  func.func @transform_14(%arg0: i32, %arg1: i32) -> (i32, i32, i32) {
    %c0_i32 = arith.constant 0 : i32
    %c0_i32_0 = arith.constant 0 : i32
    %c0_i32_1 = arith.constant 0 : i32
    return %arg1, %c0_i32, %c0_i32_0 : i32, i32, i32
  }
  func.func @transform_15(%arg0: i32, %arg1: i32) -> (i32, i32, i32) {
    %c0_i32 = arith.constant 0 : i32
    %c0_i32_0 = arith.constant 0 : i32
    %c0_i32_1 = arith.constant 0 : i32
    return %arg1, %c0_i32, %c0_i32_0 : i32, i32, i32
  }
  func.func @transform_16(%arg0: i32, %arg1: i32) -> (i32, i32, i32) {
    %c0_i32 = arith.constant 0 : i32
    %c0_i32_0 = arith.constant 0 : i32
    %c0_i32_1 = arith.constant 0 : i32
    return %arg0, %c0_i32, %c0_i32_0 : i32, i32, i32
  }
}

</mosaic_0001>

<bundles_post_ra>
// kernel: neuro_encoder_forward.1
= control target key start
LH: loop header
LB: loop body
LE: loop exit
PB: predicated region body
PF: predicated region fallthrough
CT: control target
= control target key end

     0   :  { %s4768_s0 = inlined_call_operand.vmem [shape: f32[2,8,16], index: 0, kind: input, shape index: {}]   ;;  %s4769_s1 = inlined_call_operand.vmem [shape: f32[16,32], index: 1, kind: input, shape index: {}]   ;;  %s4770_s2 = inlined_call_operand.vmem [shape: bf16[16,32], index: 2, kind: input, shape index: {}]   ;;  %s4771_s3 = inlined_call_operand.vmem [shape: f32[1,32], index: 3, kind: input, shape index: {}]   ;;  %s4772_s4 = inlined_call_operand.vmem [shape: bf16[4,32,96], index: 4, kind: input, shape index: {}]   ;;  %s4773_s5 = inlined_call_operand.vmem [shape: f32[4,1,96], index: 5, kind: input, shape index: {}]   ;;  %s4774_s6 = inlined_call_operand.vmem [shape: bf16[4,32,32], index: 6, kind: input, shape index: {}]   ;;  %s4775_s7 = inlined_call_operand.vmem [shape: f32[4,1,32], index: 7, kind: input, shape index: {}]   ;;  %s4776_s8 = inlined_call_operand.vmem [shape: bf16[4,32,128], index: 8, kind: input, shape index: {}]   ;;  %s4777_s9 = inlined_call_operand.vmem [shape: f32[4,1,128], index: 9, kind: input, shape index: {}]   ;;  %s4778_s10 = inlined_call_operand.vmem [shape: bf16[4,128,32], index: 10, kind: input, shape index: {}]   ;;  %s4779_s11 = inlined_call_operand.vmem [shape: f32[4,1,32], index: 11, kind: input, shape index: {}]   ;;  %s4780_s12 = inlined_call_operand.vmem [shape: f32[4,1,32], index: 12, kind: input, shape index: {}]   ;;  %s4781_s13 = inlined_call_operand.vmem [shape: f32[4,1,32], index: 13, kind: input, shape index: {}]   ;;  %s4782_s14 = inlined_call_operand.vmem [shape: f32[4,1,32], index: 14, kind: input, shape index: {}]   ;;  %s4783_s15 = inlined_call_operand.vmem [shape: f32[4,1,32], index: 15, kind: input, shape index: {}]   ;;  %s4784_s16 = inlined_call_operand.hbm [shape: f32[2,8,32], index: 16, kind: output, shape index: {}]  }
   0x1   :  { %4789 = sst [smem:[#allocation8_spill]] %s4768_s0 }
   0x2   :  { %4790 = sst [smem:[#allocation9_spill]] %s4769_s1 }
   0x3   :  { %4791 = sst [smem:[#allocation10_spill]] %s4771_s3 }
   0x4   :  { %4792 = sst [smem:[#allocation11_spill]] %s4772_s4 }
   0x5   :  { %4793 = sst [smem:[#allocation12_spill]] %s4774_s6 }
   0x6   :  { %4794 = sst [smem:[#allocation13_spill]] %s4776_s8 }
   0x7   :  { %4795 = sst [smem:[#allocation14_spill]] %s4777_s9 }
   0x8   :  { %4796 = sst [smem:[#allocation15_spill]] %s4784_s16 }
   0x9   :  { %21 = vsyncpa [#allocation3], 0  ;;  %s4038_s21 = smov 0   ;;  %s4040_s22 = smov 0  }
   0xa   :  { %s4042_s23 = smov 0  }
   0xb LB: > { %4797 = sst [smem:[#allocation5_spill]] %s3925_s22  ;;  %s36_s25 = sadd.s32 1, %s3925_s22  ;;  %s3929_s23 = sphi %s4042_s23, %s27_s23   ;;  %s3925_s22 = sphi %s4040_s22, %s4817_s22   ;;  %s3921_s21 = sphi %s4038_s21, %s4816_s21  }
   0xc   : > { %4798 = sst [smem:[#allocation6_spill]] %s3929_s23  ;;  %p37_p0 = scmp.ge.s32.totalorder %s36_s25, 4 }
   0xd   : > { %p3277_p1 = scmp.ge.s32.totalorder %s3929_s23, 1  ;;  %p580_p2 = scmp.lt.s32.totalorder %s3929_s23, 5 }
   0xe   : > { %s4819_s25 = smov (%p37_p0, %s36_s25), 0 }
   0xf   : > { %4799 = sst [smem:[#allocation7_spill]] %s4819_s25  ;;  %p581_p3 = pnand %p3277_p1, %p580_p2 }
  0x10   : > { %p675_p4 = scmp.lt.s32.totalorder (!%p581_p3), %s3921_s21, 3  ;;  %s4800_s4 = sld [smem:[#allocation11_spill]] (!%p581_p3) }
  0x11   : > { %584 = sbr.rel (%p581_p3) target bundleno = 2859 (0xb2b), region = 84  ;;  %s4801_s6 = sld [smem:[#allocation12_spill]] (!%p581_p3) }
  0x12   : > { %s4802_s8 = sld [smem:[#allocation13_spill]] (!%p581_p3)  ;;  %p3286_p5 = scmp.ne.s32.totalorder (!%p581_p3), %s3921_s21, 0 }
  0x16   : > { %s4057_s26 = scalar_select %p675_p4, %s3921_s21, 3 }
  0x17   : > { %s4804_s25 = sld [smem:[#allocation8_spill]] (!%p3286_p5) }
  0x18   : > { %s3367_s27 = sshll.u32 %s4057_s26, 4  ;;  %s3370_s17 = sshll.u32 %s4057_s26, 6 }
  0x19   : > { %s4067_s18 = scalar_lea.vmem %s4800_s4, %s3367_s27  ;;  %s4072_s24 = scalar_lea.vmem %s4801_s6, %s3367_s27 }
  0x1a   : > { %s4081_s3 = scalar_lea.vmem %s4802_s8, %s3367_s27  ;;  %s4091_s19 = scalar_lea.vmem %s4778_s10, %s3370_s17 }
  0x1b   : > { %s706_s22 = scalar_lea.vmem %s4779_s11, %s4057_s26  ;;  %s709_s1 = scalar_lea.vmem %s4780_s12, %s4057_s26 }
  0x1c   : > { %s712_s8 = scalar_lea.vmem %s4781_s13, %s4057_s26  ;;  %s715_s0 = scalar_lea.vmem %s4782_s14, %s4057_s26 }
  0x1d   : > { %s718_s30 = scalar_lea.vmem %s4783_s15, %s4057_s26  ;;  %724 = sbr.rel (%p3286_p5) target bundleno = 241 (0xf1), region = 88 }
  0x1e   : > { %s4805_s28 = sld [smem:[#allocation10_spill]] (!%p3286_p5) }
  0x1f   : > { %s4806_s6 = sld [smem:[#allocation9_spill]] (!%p3286_p5) }
  0x22   : > { %v3751_v0 = vld [vmem:[%s4770_s2] sm:$0xff]   ;;  %v3931_v1 = vmov 0.0   ;;  %v726_v3 = vld [vmem:[%s4804_s25 + $0x8] sm:$0xff]  ;;  %vm3932_vm0 = vmmov 0   ;;  %vm743_vm1 = vcmask 130048   ;;  %vm792_vm2 = vcmask 261120  }
  0x23   : > { %3457 = vmatprep.subr.bf16.mxu0 %v3931_v1  ;;  %v725_v2 = vld [vmem:[%s4804_s25] sm:$0xff]  ;;  %3459 = vmatprep.mubr.msk.bf16.mxu0 %vm3932_vm0, %v3931_v1 }
  0x24   : > { %3458 = vmatpush3.bf16.msra.mxu0 %v3751_v0  ;;  %v729_v4 = vpack.c.bf16 %v726_v3, %v725_v2  ;;  %v3287_v5 = vld [vmem:[%s4805_s28] ss:$0 sm:$0xff] }
  0x25   : > { %v788_v7 = vld [vmem:[%s4806_s6] sm:$0xff]  ;;  %v789_v12 = vld [vmem:[%s4806_s6 + $0x8] sm:$0xff] }
  0x27   : > { %3460 = vmatmul.mubr.msk.bf16.vlgmr.msra.gmra.mxu0 %vm743_vm1, %v729_v4 }
  0xe7   : > { %v781_v6 = vpop.f32.mrf.mxu0 }
  0xe8   : > { %v782_v8 = vadd.f32 %v3287_v5, %v781_v6 }
  0xe9   : > { %v3461_v9 = vpop.f32.mrf.mxu0 }
  0xea   : > { %v790_v10 = vadd.f32 %v788_v7, %v782_v8 }
  0xeb   : > { %v784_v11 = vpop.f32.mrf.mxu0 }
  0xec   : > { %793 = vst.msk [vmem:[#allocation2] sm:$0xff] %vm792_vm2, %v790_v10  ;;  %v785_v13 = vadd.f32 %v3287_v5, %v784_v11 }
  0xed   : > { %v3462_v14 = vpop.f32.mrf.mxu0 }
  0xee   : > { %v791_v15 = vadd.f32 %v789_v12, %v785_v13 }
  0xf0   : > { %794 = vst.msk [vmem:[#allocation2 + $0x8] sm:$0xff] %vm792_vm2, %v791_v15 }
  0xf1 PF: > { %v3787_v16 = vld [vmem:[%s4067_s18 + $0x8] sm:$0xff]   ;;  %v3933_v17 = vmov 0.0   ;;  %v3788_v18 = vld [vmem:[%s4067_s18] sm:$0xff]   ;;  %vm3934_vm3 = vmmov 0   ;;  %vm821_vm4 = vcmask 261120   ;;  %s4807_s23 = scalar_lea.vmem %s4773_s5, %s4057_s26  ;;  %s3935_s27 = smov 120  }
  0xf2   : > { %3463 = vmatprep.subr.bf16.mxu0 %v3933_v17  ;;  %3483 = vmatprep.subr.bf16.mxu1 %v3933_v17  ;;  %v3290_v22 = vld [vmem:[%s4807_s23] ss:$0 sm:$0xff]  ;;  %s3936_s9 = smov 124   ;;  %s3937_s21 = smov 116   ;;  %vm902_vm5 = vcmask 31744   ;;  %vm1895_vm6 = vcmask 1043456  }
  0xf3   : > { %3464 = vmatpush3.bf16.msra.mxu0 %v3787_v16  ;;  %3467 = vmatprep.mubr.msk.bf16.mxu0 %vm3934_vm3, %v3933_v17  ;;  %v795_v19 = vld [vmem:[#allocation2] sm:$0xff]  ;;  %s3938_s28 = smov 112   ;;  %s3939_s29 = smov 108   ;;  %vm1697_vm7 = vcmask 64512   ;;  %vm2719_vm8 = vcmask 97280   ;;  %vm2722_vm9 = vcmask 130048  }
  0xf4   : > { %3465 = vmatprep.subr.bf16.mxu0 %v3933_v17  ;;  %3485 = vmatprep.mubr.msk.bf16.mxu1 %vm3934_vm3, %v3933_v17  ;;  %s3940_s4 = smov 104   ;;  %s3941_s17 = smov 100   ;;  %vm2725_vm10 = vcmask 162816   ;;  %vm2728_vm11 = vcmask 195584   ;;  %vm2731_vm12 = vcmask 228352  }
  0xf5   : > { %s3942_s16 = smov 96   ;;  %s3943_s18 = smov 64  }
  0xf6   : > { %s3944_s20 = smov 4   ;;  %s3945_s23 = smov 8  }
  0xf7   : > { %v796_v20 = vld [vmem:[#allocation2 + $0x8] sm:$0xff]  ;;  %3466 = vmatpush3.bf16.msra.mxu0 %v3788_v18 }
  0xf8   : > { %v801_v21 = vpack.c.bf16 %v796_v20, %v795_v19  ;;  %3471 = vmatprep.subr.bf16.mxu0 %v3933_v17 }
  0xfa   : > { %3468 = vmatmul.mubr.msk.bf16.vlgmr.msra.gmra.mxu0 %vm821_vm4, %v801_v21 }
  0xfb   : > { %3473 = vmatprep.mubr.msk.bf16.mxu0 %vm3934_vm3, %v3933_v17 }
 0x1ba   : > { %v859_v23 = vpop.f32.mrf.mxu0 }
 0x1bb   : > { %v860_v24 = vadd.f32 %v3290_v22, %v859_v23 }
 0x1bc   : > { %v3469_v25 = vpop.f32.mrf.mxu0 }
 0x1bd   : > { %v4149_v26 = vpack.c.bf16 %v860_v24, %v860_v24 }
 0x1be   : > { %v862_v27 = vpop.f32.mrf.mxu0 }
 0x1bf   : > { %v863_v28 = vadd.f32 %v3290_v22, %v862_v27  ;;  %876 = vrot.lane.b32.xlu1 %v4149_v26, %s3935_s27  ;;  %872 = vrot.lane.b32.xlu0 %v4149_v26, %s3936_s9 }
 0x1c0   : > { %v3470_v29 = vpop.f32.mrf.mxu0 }
 0x1c1   : > { %v4153_v30 = vpack.c.bf16 %v863_v28, %v863_v28 }
 0x1c3   : > { %878 = vrot.lane.b32.xlu1 %v4153_v30, %s3935_s27  ;;  %874 = vrot.lane.b32.xlu0 %v4153_v30, %s3936_s9  ;;  %s3946_s27 = smov 12   ;;  %s3947_s9 = smov 16  }
 0x1c7   : > { %882 = vrot.lane.b32.xlu1 %v4153_v30, %s3937_s21  ;;  %880 = vrot.lane.b32.xlu0 %v4149_v26, %s3937_s21  ;;  %s3948_s21 = smov 20  }
 0x1cb   : > { %886 = vrot.lane.b32.xlu1 %v4153_v30, %s3938_s28  ;;  %884 = vrot.lane.b32.xlu0 %v4149_v26, %s3938_s28  ;;  %s3949_s28 = smov 24  }
 0x1cf   : > { %890 = vrot.lane.b32.xlu1 %v4153_v30, %s3939_s29  ;;  %888 = vrot.lane.b32.xlu0 %v4149_v26, %s3939_s29  ;;  %s3950_s29 = smov 28  }
 0x1d3   : > { %894 = vrot.lane.b32.xlu1 %v4153_v30, %s3940_s4  ;;  %892 = vrot.lane.b32.xlu0 %v4149_v26, %s3940_s4 }
 0x1d7   : > { %896 = vrot.lane.b32.xlu1 %v4149_v26, %s3941_s17  ;;  %900 = vrot.lane.b32.xlu0 %v4149_v26, %s3942_s16 }
 0x1db   : > { %949 = vrot.lane.b32.xlu1 %v4153_v30, %s3942_s16  ;;  %898 = vrot.lane.b32.xlu0 %v4153_v30, %s3941_s17  ;;  %s4808_s17 = scalar_lea.vmem %s4775_s7, %s4057_s26 }
 0x231   : > { %v4171_v31 = vpop.permute.xlu1 %876  ;;  %v4173_v32 = vpop.permute.xlu0 %872 }
 0x232   : > { %v3298_v33 = vcombine.low %v4173_v32, %v4173_v32  ;;  %v3302_v36 = vcombine.low %v4171_v31, %v4171_v31 }
 0x234   : > { %999 = vrot.lane.b32.xlu0 %v3298_v33, %s3942_s16 }
 0x235   : > { %v4178_v34 = vpop.permute.xlu1 %878  ;;  %v4180_v35 = vpop.permute.xlu0 %874 }
 0x236   : > { %v3300_v37 = vcombine.low %v4180_v35, %v4180_v35  ;;  %v3304_v40 = vcombine.low %v4178_v34, %v4178_v34 }
 0x238   : > { %1099 = vrot.lane.b32.xlu0 %v3302_v36, %s3942_s16  ;;  %1049 = vrot.lane.b32.xlu1 %v3300_v37, %s3942_s16 }
 0x239   : > { %v4188_v38 = vpop.permute.xlu1 %882  ;;  %v4190_v39 = vpop.permute.xlu0 %880 }
 0x23a   : > { %v3306_v41 = vcombine.low %v4190_v39, %v4190_v39  ;;  %v3308_v44 = vcombine.low %v4188_v38, %v4188_v38 }
 0x23c   : > { %1149 = vrot.lane.b32.xlu1 %v3304_v40, %s3942_s16  ;;  %1199 = vrot.lane.b32.xlu0 %v3306_v41, %s3942_s16 }
 0x23d   : > { %v4198_v42 = vpop.permute.xlu1 %886  ;;  %v4200_v43 = vpop.permute.xlu0 %884 }
 0x23e   : > { %v3310_v45 = vcombine.low %v4200_v43, %v4200_v43  ;;  %v4214_v48 = vcombine.low %v4198_v42, %v4198_v42 }
 0x240   : > { %1249 = vrot.lane.b32.xlu1 %v3308_v44, %s3942_s16  ;;  %1299 = vrot.lane.b32.xlu0 %v3310_v45, %s3942_s16 }
 0x241   : > { %v4208_v46 = vpop.permute.xlu1 %890  ;;  %v4210_v47 = vpop.permute.xlu0 %888 }
 0x242   : > { %v4218_v49 = vcombine.low %v4210_v47, %v4210_v47  ;;  %v4230_v52 = vcombine.low %v4208_v46, %v4208_v46 }
 0x244   : > { %1349 = vrot.lane.b32.xlu1 %v4214_v48, %s3942_s16  ;;  %1399 = vrot.lane.b32.xlu0 %v4218_v49, %s3942_s16 }
 0x245   : > { %v4224_v50 = vpop.permute.xlu1 %894  ;;  %v4226_v51 = vpop.permute.xlu0 %892 }
 0x246   : > { %v4234_v53 = vcombine.low %v4226_v51, %v4226_v51  ;;  %v4244_v56 = vcombine.low %v4224_v50, %v4224_v50 }
 0x248   : > { %1449 = vrot.lane.b32.xlu1 %v4230_v52, %s3942_s16  ;;  %1499 = vrot.lane.b32.xlu0 %v4234_v53, %s3942_s16 }
 0x249   : > { %v4240_v54 = vpop.permute.xlu1 %896  ;;  %v901_v55 = vpop.permute.xlu0 %900 }
 0x24a   : > { %v4248_v57 = vcombine.low %v4240_v54, %v4240_v54  ;;  %v907_v58 = vsel %vm902_vm5, %v901_v55, 0 }
 0x24b   : > { %3472 = vmatpush3.bf16.xpose.msra.mxu0 %v907_v58 }
 0x24c   : > { %1549 = vrot.lane.b32.xlu1 %v4244_v56, %s3942_s16  ;;  %1599 = vrot.lane.b32.xlu0 %v4248_v57, %s3942_s16 }
 0x24d   : > { %v4255_v59 = vpop.permute.xlu0 %898  ;;  %3477 = vmatprep.subr.bf16.mxu0 %v3933_v17  ;;  %v950_v61 = vpop.permute.xlu1 %949 }
 0x24e   : > { %v4260_v60 = vcombine.low %v4255_v59, %v4255_v59  ;;  %v955_v62 = vsel %vm902_vm5, %v950_v61, 0 }
 0x250   : > { %1939 = vrot.lane.b32.xlu0 %v4153_v30, %s3943_s18  ;;  %1649 = vrot.lane.b32.xlu1 %v4260_v60, %s3942_s16 }
 0x252   : > { %3474 = vmatmul.mubr.msk.bf16.vlgmr.msra.gmra.mxu0 %vm902_vm5, %v4149_v26 }
 0x253   : > { %3478 = vmatpush3.bf16.xpose.msra.mxu0 %v955_v62  ;;  %3479 = vmatprep.mubr.msk.bf16.mxu0 %vm3934_vm3, %v3933_v17 }
 0x254   : > { %2035 = vrot.lane.b32.xlu0 %v3300_v37, %s3943_s18  ;;  %1890 = vrot.lane.b32.xlu1 %v4149_v26, %s3943_s18 }
 0x255   : > { %3489 = vmatprep.subr.bf16.mxu0 %v3933_v17 }
 0x258   : > { %2131 = vrot.lane.b32.xlu0 %v3304_v40, %s3943_s18  ;;  %1987 = vrot.lane.b32.xlu1 %v3298_v33, %s3943_s18 }
 0x25a   : > { %3480 = vmatmul.mubr.msk.bf16.vlgmr.msra.gmra.mxu0 %vm902_vm5, %v4153_v30 }
 0x25b   : > { %3491 = vmatprep.mubr.msk.bf16.mxu0 %vm3934_vm3, %v3933_v17 }
 0x25c   : > { %2227 = vrot.lane.b32.xlu0 %v3308_v44, %s3943_s18  ;;  %2083 = vrot.lane.b32.xlu1 %v3302_v36, %s3943_s18 }
 0x260   : > { %2179 = vrot.lane.b32.xlu1 %v3306_v41, %s3943_s18 }
 0x264   : > { %2275 = vrot.lane.b32.xlu1 %v3310_v45, %s3943_s18 }
 0x2a6   : > { %v1000_v63 = vpop.permute.xlu0 %999 }
 0x2a7   : > { %v1005_v0 = vsel %vm902_vm5, %v1000_v63, 0 }
 0x2a8   : > { %3484 = vmatpush3.bf16.xpose.msra.mxu1 %v1005_v0 }
 0x2a9   : > { %3495 = vmatprep.subr.bf16.mxu1 %v3933_v17 }
 0x2aa   : > { %v1050_v1 = vpop.permute.xlu1 %1049  ;;  %v1100_v3 = vpop.permute.xlu0 %1099 }
 0x2ab   : > { %v1055_v2 = vsel %vm902_vm5, %v1050_v1, 0  ;;  %v1105_v4 = vsel %vm902_vm5, %v1100_v3, 0 }
 0x2ac   : > { %3490 = vmatpush3.bf16.xpose.msra.mxu0 %v1055_v2 }
 0x2ad   : > { %3501 = vmatprep.subr.bf16.mxu0 %v3933_v17 }
 0x2ae   : > { %v1150_v5 = vpop.permute.xlu1 %1149  ;;  %v1200_v7 = vpop.permute.xlu0 %1199 }
 0x2af   : > { %3486 = vmatmul.mubr.msk.bf16.vlgmr.msra.gmra.mxu1 %vm902_vm5, %v4173_v32  ;;  %v1155_v6 = vsel %vm902_vm5, %v1150_v5, 0  ;;  %v1205_v8 = vsel %vm902_vm5, %v1200_v7, 0 }
 0x2b0   : > { %3496 = vmatpush3.bf16.xpose.msra.mxu1 %v1105_v4  ;;  %3497 = vmatprep.mubr.msk.bf16.mxu1 %vm3934_vm3, %v3933_v17 }
 0x2b1   : > { %3507 = vmatprep.subr.bf16.mxu1 %v3933_v17 }
 0x2b2   : > { %v1250_v9 = vpop.permute.xlu1 %1249  ;;  %v1300_v11 = vpop.permute.xlu0 %1299 }
 0x2b3   : > { %3492 = vmatmul.mubr.msk.bf16.vlgmr.msra.gmra.mxu0 %vm902_vm5, %v4180_v35  ;;  %v1255_v10 = vsel %vm902_vm5, %v1250_v9, 0  ;;  %v1305_v12 = vsel %vm902_vm5, %v1300_v11, 0 }
 0x2b4   : > { %3502 = vmatpush3.bf16.xpose.msra.mxu0 %v1155_v6  ;;  %3503 = vmatprep.mubr.msk.bf16.mxu0 %vm3934_vm3, %v3933_v17 }
 0x2b5   : > { %3513 = vmatprep.subr.bf16.mxu0 %v3933_v17 }
 0x2b6   : > { %v1350_v13 = vpop.permute.xlu1 %1349  ;;  %v1400_v15 = vpop.permute.xlu0 %1399 }
 0x2b7   : > { %3498 = vmatmul.mubr.msk.bf16.vlgmr.msra.gmra.mxu1 %vm902_vm5, %v4171_v31  ;;  %v1355_v14 = vsel %vm902_vm5, %v1350_v13, 0  ;;  %v1405_v16 = vsel %vm902_vm5, %v1400_v15, 0 }
 0x2b8   : > { %3508 = vmatpush3.bf16.xpose.msra.mxu1 %v1205_v8  ;;  %3509 = vmatprep.mubr.msk.bf16.mxu1 %vm3934_vm3, %v3933_v17 }
 0x2b9   : > { %3519 = vmatprep.subr.bf16.mxu1 %v3933_v17 }
 0x2ba   : > { %v1450_v18 = vpop.permute.xlu1 %1449  ;;  %v1500_v20 = vpop.permute.xlu0 %1499 }
 0x2bb   : > { %3504 = vmatmul.mubr.msk.bf16.vlgmr.msra.gmra.mxu0 %vm902_vm5, %v4178_v34  ;;  %v1455_v19 = vsel %vm902_vm5, %v1450_v18, 0  ;;  %v1505_v21 = vsel %vm902_vm5, %v1500_v20, 0 }
 0x2bc   : > { %3514 = vmatpush3.bf16.xpose.msra.mxu0 %v1255_v10  ;;  %3515 = vmatprep.mubr.msk.bf16.mxu0 %vm3934_vm3, %v3933_v17 }
 0x2bd   : > { %3525 = vmatprep.subr.bf16.mxu0 %v3933_v17 }
 0x2be   : > { %v1550_v22 = vpop.permute.xlu1 %1549  ;;  %v1600_v24 = vpop.permute.xlu0 %1599 }
 0x2bf   : > { %3510 = vmatmul.mubr.msk.bf16.vlgmr.msra.gmra.mxu1 %vm902_vm5, %v4190_v39  ;;  %v1555_v23 = vsel %vm902_vm5, %v1550_v22, 0  ;;  %v1605_v26 = vsel %vm902_vm5, %v1600_v24, 0 }
 0x2c0   : > { %3520 = vmatpush3.bf16.xpose.msra.mxu1 %v1305_v12  ;;  %3521 = vmatprep.mubr.msk.bf16.mxu1 %vm3934_vm3, %v3933_v17 }
 0x2c1   : > { %3531 = vmatprep.subr.bf16.mxu1 %v3933_v17 }
 0x2c2   : > { %v1650_v25 = vpop.permute.xlu1 %1649  ;;  %v1940_v30 = vpop.permute.xlu0 %1939 }
 0x2c3   : > { %3516 = vmatmul.mubr.msk.bf16.vlgmr.msra.gmra.mxu0 %vm902_vm5, %v4188_v38  ;;  %v1655_v27 = vsel %vm902_vm5, %v1650_v25, 0  ;;  %v1945_v31 = vsel %vm1895_vm6, %v1940_v30, 0 }
 0x2c4   : > { %3526 = vmatpush3.bf16.xpose.msra.mxu0 %v1355_v14  ;;  %3527 = vmatprep.mubr.msk.bf16.mxu0 %vm3934_vm3, %v3933_v17 }
 0x2c5   : > { %3537 = vmatprep.subr.bf16.mxu0 %v3933_v17 }
 0x2c6   : > { %v1891_v28 = vpop.permute.xlu1 %1890 }
 0x2c7   : > { %3522 = vmatmul.mubr.msk.bf16.vlgmr.msra.gmra.mxu1 %vm902_vm5, %v4200_v43  ;;  %v1897_v29 = vsel %vm1895_vm6, %v1891_v28, 0 }
 0x2c8   : > { %3532 = vmatpush3.bf16.xpose.msra.mxu1 %v1405_v16  ;;  %3533 = vmatprep.mubr.msk.bf16.mxu1 %vm3934_vm3, %v3933_v17 }
 0x2c9   : > { %3543 = vmatprep.subr.bf16.mxu1 %v3933_v17 }
 0x2ca   : > { %v4415_v25 = vpop.permute.xlu1 %1987 }
 0x2cb   : > { %3528 = vmatmul.mubr.msk.bf16.vlgmr.msra.gmra.mxu0 %vm902_vm5, %v4198_v42 }
 0x2cc   : > { %3538 = vmatpush3.bf16.xpose.msra.mxu0 %v1455_v19  ;;  %3539 = vmatprep.mubr.msk.bf16.mxu0 %vm3934_vm3, %v3933_v17 }
 0x2cd   : > { %3549 = vmatprep.subr.bf16.mxu0 %v3933_v17 }
 0x2cf   : > { %3534 = vmatmul.mubr.msk.bf16.vlgmr.msra.gmra.mxu1 %vm902_vm5, %v4210_v47 }
 0x2d0   : > { %3544 = vmatpush3.bf16.xpose.msra.mxu1 %v1505_v21  ;;  %3545 = vmatprep.mubr.msk.bf16.mxu1 %vm3934_vm3, %v3933_v17  ;;  %v4411_v21 = vpop.permute.xlu0 %2035 }
 0x2d1   : > { %3555 = vmatprep.subr.bf16.mxu1 %v3933_v17 }
 0x2d3   : > { %3540 = vmatmul.mubr.msk.bf16.vlgmr.msra.gmra.mxu0 %vm902_vm5, %v4208_v46 }
 0x2d4   : > { %3550 = vmatpush3.bf16.xpose.msra.mxu0 %v1555_v23  ;;  %3551 = vmatprep.mubr.msk.bf16.mxu0 %vm3934_vm3, %v3933_v17 }
 0x2d5   : > { %3561 = vmatprep.subr.bf16.mxu0 %v3933_v17 }
 0x2d7   : > { %3546 = vmatmul.mubr.msk.bf16.vlgmr.msra.gmra.mxu1 %vm902_vm5, %v4226_v51 }
 0x2d8   : > { %3556 = vmatpush3.bf16.xpose.msra.mxu1 %v1605_v26  ;;  %3557 = vmatprep.mubr.msk.bf16.mxu1 %vm3934_vm3, %v3933_v17 }
 0x2d9   : > { %3567 = vmatprep.subr.bf16.mxu1 %v3933_v17 }
 0x2db   : > { %3552 = vmatmul.mubr.msk.bf16.vlgmr.msra.gmra.mxu0 %vm902_vm5, %v4224_v50 }
 0x2dc   : > { %3562 = vmatpush3.bf16.xpose.msra.mxu0 %v1655_v27  ;;  %3563 = vmatprep.mubr.msk.bf16.mxu0 %vm3934_vm3, %v3933_v17 }
 0x2dd   : > { %3573 = vmatprep.subr.bf16.mxu0 %v3933_v17 }
 0x2df   : > { %3558 = vmatmul.mubr.msk.bf16.vlgmr.msra.gmra.mxu1 %vm902_vm5, %v4240_v54 }
 0x2e0   : > { %3568 = vmatpush3.bf16.msra.mxu1 %v1897_v29  ;;  %3569 = vmatprep.mubr.msk.bf16.mxu1 %vm3934_vm3, %v3933_v17 }
 0x2e1   : > { %3579 = vmatprep.subr.bf16.mxu1 %v3933_v17 }
 0x2e3   : > { %3564 = vmatmul.mubr.msk.bf16.vlgmr.msra.gmra.mxu0 %vm902_vm5, %v4255_v59 }
 0x2e4   : > { %3574 = vmatpush3.bf16.msra.mxu0 %v1945_v31  ;;  %3575 = vmatprep.mubr.msk.bf16.mxu0 %vm3934_vm3, %v3933_v17  ;;  %v4421_v31 = vpop.permute.xlu0 %2131 }
 0x2e5   : > { %3585 = vmatprep.subr.bf16.mxu0 %v3933_v17 }
 0x312   : > { %v4373_v32 = vpop.f32.mrf.mxu0 }
 0x313   : > { %v1698_v33 = vsel %vm1697_vm7, %v4373_v32, -inf }
 0x314   : > { %1699 = vmax.xlane.f32.xlu0 %v1698_v33  ;;  %v3475_v34 = vpop.f32.mrf.mxu0 }
 0x316   : > { %v946_v35 = vpop.f32.mrf.mxu0 }
 0x317   : > { %v4425_v35 = vpop.permute.xlu1 %2083 }
 0x318   : > { %v3476_v36 = vpop.f32.mrf.mxu0 }
 0x31a   : > { %v4377_v37 = vpop.f32.mrf.mxu0 }
 0x31b   : > { %v1701_v38 = vsel %vm1697_vm7, %v4377_v37, -inf }
 0x31c   : > { %1702 = vmax.xlane.f32.xlu1 %v1701_v38  ;;  %v3481_v39 = vpop.f32.mrf.mxu0 }
 0x31e   : > { %v994_v40 = vpop.f32.mrf.mxu0 }
 0x320   : > { %v3482_v41 = vpop.f32.mrf.mxu0 }
 0x36f   : > { %v4381_v42 = vpop.f32.mrf.mxu1 }
 0x370   : > { %v1704_v43 = vsel %vm1697_vm7, %v4381_v42, -inf }
 0x371   : > { %v3487_v44 = vpop.f32.mrf.mxu1  ;;  %1705 = vmax.xlane.f32.xlu0 %v1704_v43  ;;  %v4431_v43 = vpop.permute.xlu0 %2227 }
 0x373   : > { %v1044_v45 = vpop.f32.mrf.mxu1  ;;  %v4385_v46 = vpop.f32.mrf.mxu0 }
 0x374   : > { %v1707_v47 = vsel %vm1697_vm7, %v4385_v46, -inf }
 0x375   : > { %v3488_v50 = vpop.f32.mrf.mxu1  ;;  %1708 = vmax.xlane.f32.xlu0 %v1707_v47  ;;  %v3493_v51 = vpop.f32.mrf.mxu0 }
 0x376   : > { %v4435_v50 = vpop.permute.xlu1 %2179 }
 0x377   : > { %v1094_v54 = vpop.f32.mrf.mxu0  ;;  %v4389_v55 = vpop.f32.mrf.mxu1 }
 0x378   : > { %v1710_v58 = vsel %vm1697_vm7, %v4389_v55, -inf }
 0x379   : > { %v3499_v59 = vpop.f32.mrf.mxu1  ;;  %1711 = vmax.xlane.f32.xlu1 %v1710_v58  ;;  %v3494_v61 = vpop.f32.mrf.mxu0 }
 0x37b   : > { %v1144_v62 = vpop.f32.mrf.mxu1  ;;  %v4393_v63 = vpop.f32.mrf.mxu0 }
 0x37c   : > { %v1713_v0 = vsel %vm1697_vm7, %v4393_v63, -inf }
 0x37d   : > { %v3500_v1 = vpop.f32.mrf.mxu1  ;;  %1714 = vmax.xlane.f32.xlu0 %v1713_v0  ;;  %v3505_v2 = vpop.f32.mrf.mxu0 }
 0x37f   : > { %v1194_v3 = vpop.f32.mrf.mxu0  ;;  %v4397_v4 = vpop.f32.mrf.mxu1 }
 0x380   : > { %v1716_v5 = vsel %vm1697_vm7, %v4397_v4, -inf }
 0x381   : > { %v3511_v6 = vpop.f32.mrf.mxu1  ;;  %1717 = vmax.xlane.f32.xlu1 %v1716_v5  ;;  %v3506_v7 = vpop.f32.mrf.mxu0 }
 0x382   : > { %v4444_v5 = vpop.permute.xlu1 %2275 }
 0x383   : > { %v1244_v8 = vpop.f32.mrf.mxu1  ;;  %v4401_v9 = vpop.f32.mrf.mxu0 }
 0x384   : > { %v1719_v10 = vsel %vm1697_vm7, %v4401_v9, -inf }
 0x385   : > { %v3512_v11 = vpop.f32.mrf.mxu1  ;;  %1720 = vmax.xlane.f32.xlu0 %v1719_v10  ;;  %v3517_v12 = vpop.f32.mrf.mxu0 }
 0x387   : > { %v1294_v13 = vpop.f32.mrf.mxu0  ;;  %v4405_v14 = vpop.f32.mrf.mxu1 }
 0x388   : > { %v1722_v15 = vsel %vm1697_vm7, %v4405_v14, -inf }
 0x389   : > { %v3523_v16 = vpop.f32.mrf.mxu1  ;;  %1723 = vmax.xlane.f32.xlu1 %v1722_v15  ;;  %v3518_v18 = vpop.f32.mrf.mxu0 }
 0x38b   : > { %v1344_v19 = vpop.f32.mrf.mxu1  ;;  %v4409_v20 = vpop.f32.mrf.mxu0 }
 0x38c   : > { %v1725_v22 = vsel %vm1697_vm7, %v4409_v20, -inf }
 0x38d   : > { %v3524_v23 = vpop.f32.mrf.mxu1  ;;  %1726 = vmax.xlane.f32.xlu0 %v1725_v22  ;;  %v3529_v24 = vpop.f32.mrf.mxu0 }
 0x38f   : > { %v1394_v26 = vpop.f32.mrf.mxu0  ;;  %v4417_v27 = vpop.f32.mrf.mxu1 }
 0x390   : > { %v1728_v28 = vsel %vm1697_vm7, %v4417_v27, -inf }
 0x391   : > { %v3535_v29 = vpop.f32.mrf.mxu1  ;;  %1729 = vmax.xlane.f32.xlu1 %v1728_v28  ;;  %v3530_v30 = vpop.f32.mrf.mxu0 }
 0x393   : > { %v1444_v33 = vpop.f32.mrf.mxu1  ;;  %v4423_v34 = vpop.f32.mrf.mxu0 }
 0x394   : > { %v1731_v36 = vsel %vm1697_vm7, %v4423_v34, -inf }
 0x395   : > { %v3536_v38 = vpop.f32.mrf.mxu1  ;;  %1732 = vmax.xlane.f32.xlu0 %v1731_v36  ;;  %v3541_v39 = vpop.f32.mrf.mxu0 }
 0x397   : > { %v1494_v40 = vpop.f32.mrf.mxu0  ;;  %v4429_v41 = vpop.f32.mrf.mxu1 }
 0x398   : > { %v1734_v44 = vsel %vm1697_vm7, %v4429_v41, -inf }
 0x399   : > { %v3547_v45 = vpop.f32.mrf.mxu1  ;;  %1735 = vmax.xlane.f32.xlu1 %v1734_v44  ;;  %v3542_v47 = vpop.f32.mrf.mxu0 }
 0x39b   : > { %v1544_v51 = vpop.f32.mrf.mxu1  ;;  %v4437_v54 = vpop.f32.mrf.mxu0 }
 0x39c   : > { %v1737_v58 = vsel %vm1697_vm7, %v4437_v54, -inf }
 0x39d   : > { %v3548_v59 = vpop.f32.mrf.mxu1  ;;  %v1700_v61 = vpop.xlane.xlu0 %1699  ;;  %1738 = vmax.xlane.f32.xlu0 %v1737_v58 }
 0x39e   : > { %v1746_v62 = vsub.f32 %v4373_v32, %v1700_v61  ;;  %v3553_v0 = vpop.f32.mrf.mxu0 }
 0x39f   : > { %v4442_v1 = vpop.f32.mrf.mxu1 }
 0x3a0   : > { %v1762_v2 = vmul.f32 1.442695, %v1746_v62  ;;  %v1594_v3 = vpop.f32.mrf.mxu0  ;;  %v1740_v23 = vsel %vm1697_vm7, %v4442_v1, -inf }
 0x3a1   : > { %v3559_v6 = vpop.f32.mrf.mxu1 }
 0x3a2   : > { %3801 = vpow2.f32 %v1762_v2  ;;  %v3554_v7 = vpop.f32.mrf.mxu0 }
 0x3a3   : > { %v1644_v8 = vpop.f32.mrf.mxu1 }
 0x3a4   : > { %v4446_v10 = vpop.f32.mrf.mxu0 }
 0x3a5   : > { %v3560_v11 = vpop.f32.mrf.mxu1  ;;  %v1703_v12 = vpop.xlane.xlu1 %1702  ;;  %v1743_v26 = vsel %vm1697_vm7, %v4446_v10, -inf }
 0x3a6   : > { %v1747_v13 = vsub.f32 %v4377_v37, %v1703_v12  ;;  %v3565_v15 = vpop.f32.mrf.mxu0 }
 0x3a8   : > { %v1764_v16 = vmul.f32 1.442695, %v1747_v13  ;;  %v1694_v32 = vpop.f32.mrf.mxu0 }
 0x3aa   : > { %3803 = vpow2.f32 %v1764_v16  ;;  %v3566_v18 = vpop.f32.mrf.mxu0 }
 0x3af   : > { %v4449_v19 = vpop.eup %3801 }
 0x3b0   : > { %v1794_v22 = vsel %vm1697_vm7, %v4449_v19, 0.0 }
 0x3b1   : > { %1795 = vadd.xlane.f32.xlu1 %v1794_v22 }
 0x3b5   : > { %1741 = vmax.xlane.f32.xlu1 %v1740_v23 }
 0x3b7   : > { %v4455_v24 = vpop.eup %3803 }
 0x3b8   : > { %v1797_v37 = vsel %vm1697_vm7, %v4455_v24, 0.0 }
 0x3b9   : > { %1798 = vadd.xlane.f32.xlu0 %v1797_v37 }
 0x3bd   : > { %1744 = vmax.xlane.f32.xlu0 %v1743_v26 }
 0x3c6   : > { %2371 = vrot.lane.b32.xlu1 %v4218_v49, %s3943_s18 }
 0x3ca   : > { %2419 = vrot.lane.b32.xlu1 %v4230_v52, %s3943_s18 }
 0x3d3   : > { %2323 = vrot.lane.b32.xlu0 %v4214_v48, %s3943_s18 }
 0x3fa   : > { %v1706_v28 = vpop.xlane.xlu0 %1705 }
 0x3fb   : > { %v1748_v29 = vsub.f32 %v4381_v42, %v1706_v28 }
 0x3fd   : > { %v1766_v30 = vmul.f32 1.442695, %v1748_v29 }
 0x3fe   : > { %v1709_v33 = vpop.xlane.xlu0 %1708 }
 0x3ff   : > { %3805 = vpow2.f32 %v1766_v30  ;;  %v1749_v36 = vsub.f32 %v4385_v46, %v1709_v33 }
 0x401   : > { %v1768_v38 = vmul.f32 1.442695, %v1749_v36 }
 0x402   : > { %v1712_v39 = vpop.xlane.xlu1 %1711 }
 0x403   : > { %3807 = vpow2.f32 %v1768_v38  ;;  %v1750_v40 = vsub.f32 %v4389_v55, %v1712_v39 }
 0x405   : > { %v1770_v49 = vmul.f32 1.442695, %v1750_v40 }
 0x406   : > { %v1715_v44 = vpop.xlane.xlu0 %1714 }
 0x407   : > { %3809 = vpow2.f32 %v1770_v49  ;;  %v1751_v52 = vsub.f32 %v4393_v63, %v1715_v44 }
 0x409   : > { %v1772_v45 = vmul.f32 1.442695, %v1751_v52 }
 0x40a   : > { %v1718_v48 = vpop.xlane.xlu1 %1717 }
 0x40b   : > { %3811 = vpow2.f32 %v1772_v45  ;;  %v1752_v42 = vsub.f32 %v4397_v4, %v1718_v48 }
 0x40c   : > { %v4472_v47 = vpop.eup %3805 }
 0x40d   : > { %v1774_v51 = vmul.f32 1.442695, %v1752_v42  ;;  %v1800_v46 = vsel %vm1697_vm7, %v4472_v47, 0.0  ;;  %v1993_v42 = vsel %vm1895_vm6, %v4415_v25, 0 }
 0x40e   : > { %1801 = vadd.xlane.f32.xlu1 %v1800_v46  ;;  %v1721_v58 = vpop.xlane.xlu0 %1720 }
 0x40f   : > { %3813 = vpow2.f32 %v1774_v51  ;;  %v1753_v55 = vsub.f32 %v4401_v9, %v1721_v58 }
 0x410   : > { %v4477_v59 = vpop.eup %3807 }
 0x411   : > { %v1776_v61 = vmul.f32 1.442695, %v1753_v55  ;;  %v1803_v63 = vsel %vm1697_vm7, %v4477_v59, 0.0 }
 0x412   : > { %v1724_v62 = vpop.xlane.xlu1 %1723  ;;  %1804 = vadd.xlane.f32.xlu0 %v1803_v63 }
 0x413   : > { %3815 = vpow2.f32 %v1776_v61  ;;  %v1754_v4 = vsub.f32 %v4405_v14, %v1724_v62 }
 0x414   : > { %v4482_v0 = vpop.eup %3809 }
 0x415   : > { %v1778_v2 = vmul.f32 1.442695, %v1754_v4  ;;  %v1806_v3 = vsel %vm1697_vm7, %v4482_v0, 0.0 }
 0x416   : > { %1807 = vadd.xlane.f32.xlu1 %v1806_v3  ;;  %v1727_v6 = vpop.xlane.xlu0 %1726 }
 0x417   : > { %3817 = vpow2.f32 %v1778_v2  ;;  %v1755_v9 = vsub.f32 %v4409_v20, %v1727_v6 }
 0x418   : > { %v4487_v7 = vpop.eup %3811 }
 0x419   : > { %v1780_v8 = vmul.f32 1.442695, %v1755_v9  ;;  %v1809_v11 = vsel %vm1697_vm7, %v4487_v7, 0.0 }
 0x41a   : > { %v1730_v12 = vpop.xlane.xlu1 %1729  ;;  %1810 = vadd.xlane.f32.xlu0 %v1809_v11 }
 0x41b   : > { %3819 = vpow2.f32 %v1780_v8  ;;  %v1756_v14 = vsub.f32 %v4417_v27, %v1730_v12 }
 0x41c   : > { %v4492_v13 = vpop.eup %3813 }
 0x41d   : > { %v1782_v15 = vmul.f32 1.442695, %v1756_v14  ;;  %v1812_v16 = vsel %vm1697_vm7, %v4492_v13, 0.0 }
 0x41e   : > { %1813 = vadd.xlane.f32.xlu1 %v1812_v16  ;;  %v1733_v32 = vpop.xlane.xlu0 %1732 }
 0x41f   : > { %3821 = vpow2.f32 %v1782_v15  ;;  %v1757_v20 = vsub.f32 %v4423_v34, %v1733_v32 }
 0x420   : > { %v4497_v18 = vpop.eup %3815 }
 0x421   : > { %v1784_v22 = vmul.f32 1.442695, %v1757_v20  ;;  %v1815_v23 = vsel %vm1697_vm7, %v4497_v18, 0.0 }
 0x422   : > { %1816 = vadd.xlane.f32.xlu0 %v1815_v23  ;;  %v1736_v36 = vpop.xlane.xlu1 %1735 }
 0x423   : > { %3823 = vpow2.f32 %v1784_v22  ;;  %v1758_v52 = vsub.f32 %v4429_v41, %v1736_v36  ;;  %v2089_v22 = vsel %vm1895_vm6, %v4425_v35, 0 }
 0x424   : > { %v4501_v27 = vpop.eup %3817 }
 0x425   : > { %v1818_v37 = vsel %vm1697_vm7, %v4501_v27, 0.0 }
 0x426   : > { %1819 = vadd.xlane.f32.xlu1 %v1818_v37  ;;  %v1739_v39 = vpop.xlane.xlu0 %1738 }
 0x427   : > { %v1759_v51 = vsub.f32 %v4437_v54, %v1739_v39 }
 0x428   : > { %v4505_v26 = vpop.eup %3819 }
 0x429   : > { %v1821_v28 = vsel %vm1697_vm7, %v4505_v26, 0.0 }
 0x42a   : > { %1822 = vadd.xlane.f32.xlu0 %v1821_v28 }
 0x42c   : > { %v4509_v34 = vpop.eup %3821 }
 0x42d   : > { %v1824_v29 = vsel %vm1697_vm7, %v4509_v34, 0.0 }
 0x42e   : > { %1825 = vadd.xlane.f32.xlu1 %v1824_v29  ;;  %v2137_v29 = vsel %vm1895_vm6, %v4421_v31, 0 }
 0x430   : > { %v4513_v30 = vpop.eup %3823 }
 0x431   : > { %v1827_v33 = vsel %vm1697_vm7, %v4513_v30, 0.0 }
 0x432   : > { %1828 = vadd.xlane.f32.xlu0 %v1827_v33 }
 0x43a   : > { %v1796_v38 = vpop.xlane.xlu1 %1795 }
 0x43b   : > { %3825 = vrcp.f32 %v1796_v38  ;;  %v2185_v38 = vsel %vm1895_vm6, %v4435_v50, 0 }
 0x43e   : > { %v1742_v45 = vpop.xlane.xlu1 %1741 }
 0x43f   : > { %2515 = vrot.lane.b32.xlu1 %v4244_v56, %s3943_s18  ;;  %v1786_v56 = vmul.f32 1.442695, %v1758_v52  ;;  %v1760_v46 = vsub.f32 %v4442_v1, %v1742_v45  ;;  %v2041_v1 = vsel %vm1895_vm6, %v4411_v21, 0  ;;  %v2281_v45 = vsel %vm1895_vm6, %v4444_v5, 0 }
 0x441   : > { %v1790_v58 = vmul.f32 1.442695, %v1760_v46 }
 0x442   : > { %v1799_v40 = vpop.xlane.xlu0 %1798  ;;  %v4559_v6 = vpop.permute.xlu1 %2371 }
 0x443   : > { %3827 = vrcp.f32 %v1799_v40  ;;  %v2377_v46 = vsel %vm1895_vm6, %v4559_v6, 0 }
 0x444   : > { %3829 = vpow2.f32 %v1786_v56 }
 0x446   : > { %v4561_v9 = vpop.permute.xlu1 %2419 }
 0x448   : > { %v3826_v49 = vpop.eup %3825  ;;  %2467 = vrot.lane.b32.xlu0 %v4234_v53, %s3943_s18  ;;  %v1745_v53 = vpop.xlane.xlu0 %1744 }
 0x449   : > { %v1858_v44 = vmul.f32 %v3826_v49, %v4449_v19  ;;  %v1788_v19 = vmul.f32 1.442695, %v1759_v51  ;;  %v1761_v25 = vsub.f32 %v4446_v10, %v1745_v53  ;;  %v2233_v49 = vsel %vm1895_vm6, %v4431_v43, 0 }
 0x44b   : > { %v1874_v48 = vpack.c.bf16 %v1858_v44, %v1858_v44  ;;  %3831 = vpow2.f32 %v1788_v19  ;;  %v1792_v61 = vmul.f32 1.442695, %v1761_v25  ;;  %v2425_v19 = vsel %vm1895_vm6, %v4561_v9, 0 }
 0x44c   : > { %3833 = vpow2.f32 %v1790_v58  ;;  %v4563_v8 = vpop.permute.xlu0 %2323 }
 0x44d   : > { %3570 = vmatmul.mubr.msk.bf16.vlgmr.msra.gmra.mxu1 %vm1697_vm7, %v1874_v48  ;;  %3835 = vpow2.f32 %v1792_v61  ;;  %v2329_v51 = vsel %vm1895_vm6, %v4563_v8, 0 }
 0x44e   : > { %3580 = vmatpush3.bf16.msra.mxu1 %v1993_v42  ;;  %3581 = vmatprep.mubr.msk.bf16.mxu1 %vm3934_vm3, %v3933_v17 }
 0x44f   : > { %3591 = vmatprep.subr.bf16.mxu1 %v3933_v17 }
 0x450   : > { %v3828_v41 = vpop.eup %3827 }
 0x451   : > { %v1859_v54 = vmul.f32 %v3828_v41, %v4455_v24  ;;  %v4539_v63 = vpop.eup %3829 }
 0x452   : > { %v1830_v24 = vsel %vm1697_vm7, %v4539_v63, 0.0 }
 0x453   : > { %v1875_v55 = vpack.c.bf16 %v1859_v54, %v1859_v54 }
 0x455   : > { %3576 = vmatmul.mubr.msk.bf16.vlgmr.msra.gmra.mxu0 %vm1697_vm7, %v1875_v55 }
 0x456   : > { %3586 = vmatpush3.bf16.msra.mxu0 %v2041_v1  ;;  %3587 = vmatprep.mubr.msk.bf16.mxu0 %vm3934_vm3, %v3933_v17 }
 0x457   : > { %3597 = vmatprep.subr.bf16.mxu0 %v3933_v17 }
 0x458   : > { %v4541_v10 = vpop.eup %3831 }
 0x459   : > { %v4545_v62 = vpop.eup %3833  ;;  %v1833_v4 = vsel %vm1697_vm7, %v4541_v10, 0.0 }
 0x45a   : > { %v1836_v21 = vsel %vm1697_vm7, %v4545_v62, 0.0  ;;  %v4551_v2 = vpop.eup %3835 }
 0x45b   : > { %v1839_v3 = vsel %vm1697_vm7, %v4551_v2, 0.0 }
 0x463   : > { %1831 = vadd.xlane.f32.xlu1 %v1830_v24 }
 0x467   : > { %1837 = vadd.xlane.f32.xlu1 %v1836_v21  ;;  %1834 = vadd.xlane.f32.xlu0 %v1833_v4 }
 0x46b   : > { %1840 = vadd.xlane.f32.xlu0 %v1839_v3 }
 0x478   : > { %2611 = vrot.lane.b32.xlu1 %v4260_v60, %s3943_s18 }
 0x481   : > { %2563 = vrot.lane.b32.xlu0 %v4248_v57, %s3943_s18 }
 0x497   : > { %v1802_v11 = vpop.xlane.xlu1 %1801 }
 0x498   : > { %3837 = vrcp.f32 %v1802_v11 }
 0x49b   : > { %v1805_v12 = vpop.xlane.xlu0 %1804 }
 0x49c   : > { %3839 = vrcp.f32 %v1805_v12 }
 0x49f   : > { %v1808_v14 = vpop.xlane.xlu1 %1807 }
 0x4a0   : > { %3841 = vrcp.f32 %v1808_v14 }
 0x4a3   : > { %v1811_v15 = vpop.xlane.xlu0 %1810 }
 0x4a4   : > { %3843 = vrcp.f32 %v1811_v15 }
 0x4a5   : > { %v3838_v16 = vpop.eup %3837 }
 0x4a6   : > { %v1860_v60 = vmul.f32 %v3838_v16, %v4472_v47 }
 0x4a7   : > { %v1814_v32 = vpop.xlane.xlu1 %1813 }
 0x4a8   : > { %3845 = vrcp.f32 %v1814_v32  ;;  %v1876_v57 = vpack.c.bf16 %v1860_v60, %v1860_v60 }
 0x4a9   : > { %v3840_v20 = vpop.eup %3839 }
 0x4aa   : > { %3582 = vmatmul.mubr.msk.bf16.vlgmr.msra.gmra.mxu1 %vm1697_vm7, %v1876_v57  ;;  %v1861_v23 = vmul.f32 %v3840_v20, %v4477_v59 }
 0x4ab   : > { %3592 = vmatpush3.bf16.msra.mxu1 %v2089_v22  ;;  %v1817_v37 = vpop.xlane.xlu0 %1816  ;;  %3593 = vmatprep.mubr.msk.bf16.mxu1 %vm3934_vm3, %v3933_v17 }
 0x4ac   : > { %3847 = vrcp.f32 %v1817_v37  ;;  %v1877_v28 = vpack.c.bf16 %v1861_v23, %v1861_v23  ;;  %3603 = vmatprep.subr.bf16.mxu1 %v3933_v17 }
 0x4ad   : > { %v3842_v47 = vpop.eup %3841 }
 0x4ae   : > { %3588 = vmatmul.mubr.msk.bf16.vlgmr.msra.gmra.mxu0 %vm1697_vm7, %v1877_v28  ;;  %v1862_v35 = vmul.f32 %v3842_v47, %v4482_v0 }
 0x4af   : > { %3598 = vmatpush3.bf16.msra.mxu0 %v2137_v29  ;;  %v1820_v33 = vpop.xlane.xlu1 %1819  ;;  %3599 = vmatprep.mubr.msk.bf16.mxu0 %vm3934_vm3, %v3933_v17 }
 0x4b0   : > { %3849 = vrcp.f32 %v1820_v33  ;;  %v1878_v59 = vpack.c.bf16 %v1862_v35, %v1862_v35  ;;  %3609 = vmatprep.subr.bf16.mxu0 %v3933_v17 }
 0x4b1   : > { %v3844_v36 = vpop.eup %3843 }
 0x4b2   : > { %3594 = vmatmul.mubr.msk.bf16.vlgmr.msra.gmra.mxu1 %vm1697_vm7, %v1878_v59  ;;  %v1863_v31 = vmul.f32 %v3844_v36, %v4487_v7 }
 0x4b3   : > { %3604 = vmatpush3.bf16.msra.mxu1 %v2185_v38  ;;  %v1823_v39 = vpop.xlane.xlu0 %1822  ;;  %3605 = vmatprep.mubr.msk.bf16.mxu1 %vm3934_vm3, %v3933_v17 }
 0x4b4   : > { %3851 = vrcp.f32 %v1823_v39  ;;  %v1879_v0 = vpack.c.bf16 %v1863_v31, %v1863_v31  ;;  %3615 = vmatprep.subr.bf16.mxu1 %v3933_v17 }
 0x4b5   : > { %v3846_v40 = vpop.eup %3845 }
 0x4b6   : > { %3600 = vmatmul.mubr.msk.bf16.vlgmr.msra.gmra.mxu0 %vm1697_vm7, %v1879_v0  ;;  %v1864_v50 = vmul.f32 %v3846_v40, %v4492_v13 }
 0x4b7   : > { %3610 = vmatpush3.bf16.msra.mxu0 %v2233_v49  ;;  %v1826_v44 = vpop.xlane.xlu1 %1825  ;;  %3611 = vmatprep.mubr.msk.bf16.mxu0 %vm3934_vm3, %v3933_v17 }
 0x4b8   : > { %3853 = vrcp.f32 %v1826_v44  ;;  %v1880_v7 = vpack.c.bf16 %v1864_v50, %v1864_v50  ;;  %3621 = vmatprep.subr.bf16.mxu0 %v3933_v17 }
 0x4b9   : > { %v3848_v52 = vpop.eup %3847 }
 0x4ba   : > { %3606 = vmatmul.mubr.msk.bf16.vlgmr.msra.gmra.mxu1 %vm1697_vm7, %v1880_v7  ;;  %v1865_v43 = vmul.f32 %v3848_v52, %v4497_v18 }
 0x4bb   : > { %3616 = vmatpush3.bf16.msra.mxu1 %v2281_v45  ;;  %v1829_v48 = vpop.xlane.xlu0 %1828  ;;  %3617 = vmatprep.mubr.msk.bf16.mxu1 %vm3934_vm3, %v3933_v17  ;;  %v2516_v61 = vpop.permute.xlu1 %2515 }
 0x4bc   : > { %3855 = vrcp.f32 %v1829_v48  ;;  %v1881_v13 = vpack.c.bf16 %v1865_v43, %v1865_v43  ;;  %3627 = vmatprep.subr.bf16.mxu1 %v3933_v17  ;;  %v2521_v24 = vsel %vm1895_vm6, %v2516_v61, 0 }
 0x4bd   : > { %v3850_v42 = vpop.eup %3849 }
 0x4be   : > { %3612 = vmatmul.mubr.msk.bf16.vlgmr.msra.gmra.mxu0 %vm1697_vm7, %v1881_v13  ;;  %v1866_v5 = vmul.f32 %v3850_v42, %v4501_v27 }
 0x4bf   : > { %3622 = vmatpush3.bf16.msra.mxu0 %v2329_v51  ;;  %3623 = vmatprep.mubr.msk.bf16.mxu0 %vm3934_vm3, %v3933_v17  ;;  %v2468_v25 = vpop.permute.xlu0 %2467 }
 0x4c0   : > { %v1882_v18 = vpack.c.bf16 %v1866_v5, %v1866_v5  ;;  %3633 = vmatprep.subr.bf16.mxu0 %v3933_v17  ;;  %v2473_v55 = vsel %vm1895_vm6, %v2468_v25, 0 }
 0x4c1   : > { %v3852_v56 = vpop.eup %3851 }
 0x4c2   : > { %3618 = vmatmul.mubr.msk.bf16.vlgmr.msra.gmra.mxu1 %vm1697_vm7, %v1882_v18  ;;  %v1867_v53 = vmul.f32 %v3852_v56, %v4505_v26 }
 0x4c3   : > { %3628 = vmatpush3.bf16.msra.mxu1 %v2377_v46  ;;  %3629 = vmatprep.mubr.msk.bf16.mxu1 %vm3934_vm3, %v3933_v17 }
 0x4c4   : > { %v1883_v27 = vpack.c.bf16 %v1867_v53, %v1867_v53  ;;  %3639 = vmatprep.subr.bf16.mxu1 %v3933_v17 }
 0x4c5   : > { %v3854_v41 = vpop.eup %3853 }
 0x4c6   : > { %3624 = vmatmul.mubr.msk.bf16.vlgmr.msra.gmra.mxu0 %vm1697_vm7, %v1883_v27  ;;  %v1868_v58 = vmul.f32 %v3854_v41, %v4509_v34 }
 0x4c7   : > { %3634 = vmatpush3.bf16.msra.mxu0 %v2425_v19  ;;  %3635 = vmatprep.mubr.msk.bf16.mxu0 %vm3934_vm3, %v3933_v17 }
 0x4c8   : > { %v1884_v26 = vpack.c.bf16 %v1868_v58, %v1868_v58  ;;  %3645 = vmatprep.subr.bf16.mxu0 %v3933_v17 }
 0x4c9   : > { %v3856_v54 = vpop.eup %3855 }
 0x4ca   : > { %3630 = vmatmul.mubr.msk.bf16.vlgmr.msra.gmra.mxu1 %vm1697_vm7, %v1884_v26  ;;  %v1869_v1 = vmul.f32 %v3856_v54, %v4513_v30 }
 0x4cb   : > { %3640 = vmatpush3.bf16.msra.mxu1 %v2473_v55  ;;  %3641 = vmatprep.mubr.msk.bf16.mxu1 %vm3934_vm3, %v3933_v17 }
 0x4cc   : > { %v1885_v34 = vpack.c.bf16 %v1869_v1, %v1869_v1  ;;  %3651 = vmatprep.subr.bf16.mxu1 %v3933_v17 }
 0x4ce   : > { %3636 = vmatmul.mubr.msk.bf16.vlgmr.msra.gmra.mxu0 %vm1697_vm7, %v1885_v34 }
 0x4cf   : > { %3646 = vmatpush3.bf16.msra.mxu0 %v2521_v24  ;;  %3647 = vmatprep.mubr.msk.bf16.mxu0 %vm3934_vm3, %v3933_v17 }
 0x4d0   : > { %3657 = vmatprep.subr.bf16.mxu0 %v3933_v17 }
 0x4ec   : > { %v1832_v21 = vpop.xlane.xlu1 %1831 }
 0x4ed   : > { %3857 = vrcp.f32 %v1832_v21 }
 0x4f0   : > { %v1838_v30 = vpop.xlane.xlu1 %1837  ;;  %v1835_v4 = vpop.xlane.xlu0 %1834 }
 0x4f1   : > { %3859 = vrcp.f32 %v1838_v30 }
 0x4f2   : > { %3861 = vrcp.f32 %v1835_v4 }
 0x4f4   : > { %v1841_v3 = vpop.xlane.xlu0 %1840  ;;  %v2612_v60 = vpop.permute.xlu1 %2611 }
 0x4f5   : > { %3863 = vrcp.f32 %v1841_v3  ;;  %v2617_v20 = vsel %vm1895_vm6, %v2612_v60, 0 }
 0x4f8   : > { %v2564_v8 = vpop.permute.xlu0 %2563 }
 0x4f9   : > { %v2569_v15 = vsel %vm1895_vm6, %v2564_v8, 0 }
 0x4fa   : > { %v3858_v6 = vpop.eup %3857 }
 0x4fb   : > { %v1870_v9 = vmul.f32 %v3858_v6, %v4539_v63 }
 0x4fd   : > { %v1886_v11 = vpack.c.bf16 %v1870_v9, %v1870_v9 }
 0x4fe   : > { %v3860_v12 = vpop.eup %3859 }
 0x4ff   : > { %v3862_v14 = vpop.eup %3861  ;;  %3642 = vmatmul.mubr.msk.bf16.vlgmr.msra.gmra.mxu1 %vm1697_vm7, %v1886_v11  ;;  %v1872_v32 = vmul.f32 %v3860_v12, %v4545_v62 }
 0x500   : > { %3652 = vmatpush3.bf16.msra.mxu1 %v2569_v15  ;;  %v1871_v16 = vmul.f32 %v3862_v14, %v4541_v10  ;;  %3653 = vmatprep.mubr.msk.bf16.mxu1 %vm3934_vm3, %v3933_v17  ;;  %v3789_v15 = vld [vmem:[%s4072_s24 + $0x8] sm:$0xff]  }
 0x501   : > { %3663 = vmatprep.subr.bf16.mxu1 %v3933_v17  ;;  %v1888_v22 = vpack.c.bf16 %v1872_v32, %v1872_v32 }
 0x502   : > { %v1887_v63 = vpack.c.bf16 %v1871_v16, %v1871_v16  ;;  %v3864_v57 = vpop.eup %3863 }
 0x503   : > { %v1873_v10 = vmul.f32 %v3864_v57, %v4551_v2 }
 0x504   : > { %3648 = vmatmul.mubr.msk.bf16.vlgmr.msra.gmra.mxu0 %vm1697_vm7, %v1887_v63  ;;  %v3790_v63 = vld [vmem:[%s4072_s24] sm:$0xff]  }
 0x505   : > { %3658 = vmatpush3.bf16.msra.mxu0 %v2617_v20  ;;  %3659 = vmatprep.mubr.msk.bf16.mxu0 %vm3934_vm3, %v3933_v17  ;;  %v1889_v62 = vpack.c.bf16 %v1873_v10, %v1873_v10 }
 0x506   : > { %3671 = vmatprep.subr.bf16.mxu0 %v3933_v17 }
 0x507   : > { %3654 = vmatmul.mubr.msk.bf16.vlgmr.msra.gmra.mxu1 %vm1697_vm7, %v1888_v22 }
 0x508   : > { %3667 = vmatprep.mubr.msk.bf16.mxu1 %vm3934_vm3, %v3933_v17  ;;  %3664 = vmatpush3.bf16.msra.mxu1 %v3789_v15 }
 0x509   : > { %3665 = vmatprep.subr.bf16.mxu1 %v3933_v17 }
 0x50c   : > { %3660 = vmatmul.mubr.msk.bf16.vlgmr.msra.gmra.mxu0 %vm1697_vm7, %v1889_v62  ;;  %3666 = vmatpush3.bf16.msra.mxu1 %v3790_v63 }
 0x50d   : > { %v4651_v23 = vpop.f32.mrf.mxu1  ;;  %3675 = vmatprep.mubr.msk.bf16.mxu0 %vm3934_vm3, %v3933_v17  ;;  %3679 = vmatprep.subr.bf16.mxu1 %v3933_v17 }
 0x50f   : > { %v3571_v37 = vpop.f32.mrf.mxu1 }
 0x511   : > { %v1936_v28 = vpop.f32.mrf.mxu1 }
 0x513   : > { %v3572_v47 = vpop.f32.mrf.mxu1 }
 0x515   : > { %v4655_v29 = vpop.f32.mrf.mxu0 }
 0x517   : > { %v3577_v2 = vpop.f32.mrf.mxu0 }
 0x519   : > { %v1984_v35 = vpop.f32.mrf.mxu0 }
 0x51b   : > { %v3578_v33 = vpop.f32.mrf.mxu0 }
 0x56a   : > { %v2029_v59 = vpop.f32.mrf.mxu1 }
 0x56c   : > { %v3583_v36 = vpop.f32.mrf.mxu1 }
 0x56e   : > { %v2032_v38 = vpop.f32.mrf.mxu1  ;;  %v2077_v31 = vpop.f32.mrf.mxu0 }
 0x56f   : > { %v3752_v39 = vpack.i.bf16 %v2077_v31, %v2029_v59 }
 0x570   : > { %v3584_v0 = vpop.f32.mrf.mxu1  ;;  %v3589_v40 = vpop.f32.mrf.mxu0 }
 0x571   : > { %3753 = vrot.lane.b32.xlu0 %v3752_v39, %s3944_s20 }
 0x572   : > { %v2080_v49 = vpop.f32.mrf.mxu0  ;;  %v2125_v50 = vpop.f32.mrf.mxu1 }
 0x574   : > { %v3590_v44 = vpop.f32.mrf.mxu0  ;;  %v3595_v7 = vpop.f32.mrf.mxu1 }
 0x576   : > { %v2128_v52 = vpop.f32.mrf.mxu1  ;;  %v2173_v45 = vpop.f32.mrf.mxu0 }
 0x577   : > { %v3757_v43 = vpack.i.bf16 %v2173_v45, %v2125_v50 }
 0x578   : > { %v3596_v48 = vpop.f32.mrf.mxu1  ;;  %v3601_v13 = vpop.f32.mrf.mxu0 }
 0x579   : > { %3758 = vrot.lane.b32.xlu1 %v3757_v43, %s3945_s23 }
 0x57a   : > { %v2176_v42 = vpop.f32.mrf.mxu0  ;;  %v2221_v51 = vpop.f32.mrf.mxu1 }
 0x57c   : > { %v3602_v5 = vpop.f32.mrf.mxu0  ;;  %v3607_v18 = vpop.f32.mrf.mxu1 }
 0x57e   : > { %v2224_v56 = vpop.f32.mrf.mxu1  ;;  %v2269_v46 = vpop.f32.mrf.mxu0 }
 0x57f   : > { %v3762_v53 = vpack.i.bf16 %v2269_v46, %v2221_v51 }
 0x580   : > { %v3608_v27 = vpop.f32.mrf.mxu1  ;;  %v3613_v41 = vpop.f32.mrf.mxu0 }
 0x581   : > { %3763 = vrot.lane.b32.xlu0 %v3762_v53, %s3946_s27  ;;  %s4809_s27 = sld [smem:[#allocation14_spill]] }
 0x582   : > { %v2272_v19 = vpop.f32.mrf.mxu0  ;;  %v2317_v58 = vpop.f32.mrf.mxu1 }
 0x584   : > { %v3614_v25 = vpop.f32.mrf.mxu0  ;;  %v3619_v26 = vpop.f32.mrf.mxu1 }
 0x586   : > { %v2320_v54 = vpop.f32.mrf.mxu1  ;;  %v2365_v55 = vpop.f32.mrf.mxu0 }
 0x587   : > { %v3767_v1 = vpack.i.bf16 %v2365_v55, %v2317_v58 }
 0x588   : > { %v3620_v61 = vpop.f32.mrf.mxu1  ;;  %v3625_v34 = vpop.f32.mrf.mxu0 }
 0x589   : > { %3768 = vrot.lane.b32.xlu1 %v3767_v1, %s3947_s9  ;;  %s4810_s9 = scalar_lea.vmem %s4809_s27, %s4057_s26 }
 0x58a   : > { %v2368_v24 = vpop.f32.mrf.mxu0  ;;  %v2413_v21 = vpop.f32.mrf.mxu1 }
 0x58c   : > { %v3626_v30 = vpop.f32.mrf.mxu0  ;;  %v3631_v4 = vpop.f32.mrf.mxu1 }
 0x58e   : > { %v2416_v3 = vpop.f32.mrf.mxu1  ;;  %v2461_v6 = vpop.f32.mrf.mxu0 }
 0x58f   : > { %v3772_v9 = vpack.i.bf16 %v2461_v6, %v2413_v21  ;;  %v3342_v3 = vld [vmem:[%s4808_s17] ss:$0 sm:$0xff]  ;;  %s3951_s17 = smov [#allocation2]  }
 0x590   : > { %v3632_v8 = vpop.f32.mrf.mxu1  ;;  %v3637_v11 = vpop.f32.mrf.mxu0 }
 0x591   : > { %3773 = vrot.lane.b32.xlu0 %v3772_v9, %s3948_s21  ;;  %v3877_v11 = vld [vmem:[#allocation2] sm:$0xff] }
 0x592   : > { %v2464_v12 = vpop.f32.mrf.mxu0 }
 0x594   : > { %v3638_v14 = vpop.f32.mrf.mxu0 }
 0x5bf   : > { %v2509_v16 = vpop.f32.mrf.mxu1 }
 0x5c1   : > { %v3643_v60 = vpop.f32.mrf.mxu1 }
 0x5c3   : > { %v2512_v32 = vpop.f32.mrf.mxu1 }
 0x5c4   : > { %v2557_v57 = vpop.f32.mrf.mxu0  ;;  %v3878_v32 = vld [vmem:[#allocation2 + $0x8] sm:$0xff] }
 0x5c5   : > { %v3777_v20 = vpack.i.bf16 %v2557_v57, %v2509_v16  ;;  %v3644_v22 = vpop.f32.mrf.mxu1 }
 0x5c6   : > { %v3649_v10 = vpop.f32.mrf.mxu0 }
 0x5c7   : > { %3778 = vrot.lane.b32.xlu1 %v3777_v20, %s3949_s28  ;;  %v2605_v62 = vpop.f32.mrf.mxu1 }
 0x5c8   : > { %v2560_v37 = vpop.f32.mrf.mxu0 }
 0x5c9   : > { %v3655_v28 = vpop.f32.mrf.mxu1 }
 0x5ca   : > { %v3650_v47 = vpop.f32.mrf.mxu0 }
 0x5cb   : > { %v2608_v2 = vpop.f32.mrf.mxu1 }
 0x5cc   : > { %v2653_v35 = vpop.f32.mrf.mxu0 }
 0x5cd   : > { %v3782_v33 = vpack.i.bf16 %v2653_v35, %v2605_v62  ;;  %v3656_v59 = vpop.f32.mrf.mxu1 }
 0x5ce   : > { %v3661_v36 = vpop.f32.mrf.mxu0  ;;  %v3791_v59 = vld [vmem:[%s4081_s3 + $0x8] sm:$0xff]  }
 0x5cf   : > { %3783 = vrot.lane.b32.xlu0 %v3782_v33, %s3950_s29  ;;  %3672 = vmatpush3.bf16.msra.mxu0 %v3791_v59  ;;  %v3792_v36 = vld [vmem:[%s4081_s3] sm:$0xff]   ;;  %s3097_s3 = sshll.u32 %s3951_s17, 4  ;;  %s3098_s3 = int_to_ptr.vmem [resolvable:$true] %s3097_s3 }
 0x5d0   : > { %v2656_v38 = vpop.f32.mrf.mxu0  ;;  %3673 = vmatprep.subr.bf16.mxu0 %v3933_v17  ;;  %s3879_s26 = scalar_lea.vmem %s3098_s3, 256  ;;  %p3886_p10 = scmp.lt.s32.totalorder %s3098_s3, %s3098_s3 }
 0x5d1   : > { %v3793_v38 = vld [vmem:[%s4091_s19 + $0x38] sm:$0xff]   ;;  %p3880_p7 = scmp.ne.s32.totalorder %s3098_s3, %s3879_s26  ;;  %p3887_p11 = scmp.lt.s32.totalorder %s3879_s26, %s3879_s26 }
 0x5d2   : > { %v3662_v31 = vpop.f32.mrf.mxu0 }
 0x5d3   : > { %3674 = vmatpush3.bf16.msra.mxu0 %v3792_v36  ;;  %p3888_p12 = por %p3887_p11, %p3886_p10 }
 0x5e3   : > { %v3754_v39 = vpop.permute.xlu0 %3753 }
 0x5e4   : > { %v3756_v50 = vunpack.i.h.bf16 %v3754_v39  ;;  %v3755_v44 = vunpack.i.l.bf16 %v3754_v39 }
 0x5e6   : > { %v2716_v5 = vsel %vm902_vm5, %v4655_v29, %v3756_v50  ;;  %v2715_v18 = vsel %vm902_vm5, %v4651_v23, %v3755_v44 }
 0x5eb   : > { %v3759_v0 = vpop.permute.xlu1 %3758 }
 0x5ec   : > { %v3761_v7 = vunpack.i.h.bf16 %v3759_v0  ;;  %v3760_v52 = vunpack.i.l.bf16 %v3759_v0 }
 0x5ee   : > { %v2718_v53 = vsel %vm1697_vm7, %v2716_v5, %v3761_v7  ;;  %v2717_v27 = vsel %vm1697_vm7, %v2715_v18, %v3760_v52  ;;  %v3346_v52 = vld [vmem:[%s709_s1] ss:$0 sm:$0xff] }
 0x5f3   : > { %v3764_v40 = vpop.permute.xlu0 %3763 }
 0x5f4   : > { %v3766_v43 = vunpack.i.h.bf16 %v3764_v40  ;;  %v3765_v48 = vunpack.i.l.bf16 %v3764_v40 }
 0x5f6   : > { %v2721_v58 = vsel %vm2719_vm8, %v2718_v53, %v3766_v43  ;;  %v2720_v25 = vsel %vm2719_vm8, %v2717_v27, %v3765_v48  ;;  %v3796_v53 = vld [vmem:[%s4091_s19 + $0x20] sm:$0xff]   ;;  %v3797_v27 = vld [vmem:[%s4091_s19 + $0x18] sm:$0xff]  }
 0x5fb   : > { %v3769_v49 = vpop.permute.xlu1 %3768 }
 0x5fc   : > { %v3771_v42 = vunpack.i.h.bf16 %v3769_v49  ;;  %v3770_v51 = vunpack.i.l.bf16 %v3769_v49 }
 0x5fe   : > { %v2724_v26 = vsel %vm2722_vm9, %v2721_v58, %v3771_v42  ;;  %v2723_v29 = vsel %vm2722_vm9, %v2720_v25, %v3770_v51  ;;  %v3800_v58 = vld [vmem:[%s4091_s19] sm:$0xff]  }
 0x5ff   : > { %v3348_v25 = vld [vmem:[%s4810_s9] ss:$0 sm:$0xff] }
 0x603   : > { %v3774_v45 = vpop.permute.xlu0 %3773 }
 0x604   : > { %v3776_v56 = vunpack.i.h.bf16 %v3774_v45  ;;  %v3775_v46 = vunpack.i.l.bf16 %v3774_v45 }
 0x606   : > { %v2727_v54 = vsel %vm2725_vm10, %v2724_v26, %v3776_v56  ;;  %v2726_v55 = vsel %vm2725_vm10, %v2723_v29, %v3775_v46  ;;  %v3794_v56 = vld [vmem:[%s4091_s19 + $0x30] sm:$0xff]   ;;  %v3795_v46 = vld [vmem:[%s4091_s19 + $0x28] sm:$0xff]  }
 0x639   : > { %v3779_v13 = vpop.permute.xlu1 %3778 }
 0x63a   : > { %v3781_v41 = vunpack.i.h.bf16 %v3779_v13  ;;  %v3780_v19 = vunpack.i.l.bf16 %v3779_v13  ;;  %v3347_v13 = vld [vmem:[%s712_s8] ss:$0 sm:$0xff] }
 0x63c   : > { %v2730_v34 = vsel %vm2728_vm11, %v2727_v54, %v3781_v41  ;;  %v2729_v24 = vsel %vm2728_vm11, %v2726_v55, %v3780_v19  ;;  %v3798_v41 = vld [vmem:[%s4091_s19 + $0x10] sm:$0xff]   ;;  %v3799_v19 = vld [vmem:[%s4091_s19 + $0x8] sm:$0xff]  }
 0x641   : > { %v3784_v23 = vpop.permute.xlu0 %3783 }
 0x642   : > { %v3786_v1 = vunpack.i.h.bf16 %v3784_v23  ;;  %v3785_v61 = vunpack.i.l.bf16 %v3784_v23 }
 0x644   : > { %v2733_v21 = vsel %vm2731_vm12, %v2730_v34, %v3786_v1  ;;  %v2732_v30 = vsel %vm2731_vm12, %v2729_v24, %v3785_v61 }
 0x645   : > { %v2738_v4 = vpack.c.bf16 %v2733_v21, %v2732_v30 }
 0x647   : > { %3668 = vmatmul.mubr.msk.bf16.vlgmr.msra.gmra.mxu1 %vm821_vm4, %v2738_v4 }
 0x648   : > { %3695 = vmatprep.mubr.msk.bf16.mxu1 %vm3934_vm3, %v3933_v17  ;;  %3680 = vmatpush3.bf16.msra.mxu1 %v3793_v38 }
 0x649   : > { %3681 = vmatprep.subr.bf16.mxu1 %v3933_v17 }
 0x64c   : > { %3682 = vmatpush3.bf16.msra.mxu1 %v3794_v56 }
 0x64d   : > { %3683 = vmatprep.subr.bf16.mxu1 %v3933_v17 }
 0x650   : > { %3684 = vmatpush3.bf16.msra.mxu1 %v3795_v46 }
 0x651   : > { %3685 = vmatprep.subr.bf16.mxu1 %v3933_v17 }
 0x654   : > { %3686 = vmatpush3.bf16.msra.mxu1 %v3796_v53 }
 0x655   : > { %3687 = vmatprep.subr.bf16.mxu1 %v3933_v17 }
 0x658   : > { %3688 = vmatpush3.bf16.msra.mxu1 %v3797_v27 }
 0x659   : > { %3689 = vmatprep.subr.bf16.mxu1 %v3933_v17 }
 0x65c   : > { %3690 = vmatpush3.bf16.msra.mxu1 %v3798_v41 }
 0x65d   : > { %3691 = vmatprep.subr.bf16.mxu1 %v3933_v17 }
 0x660   : > { %3692 = vmatpush3.bf16.msra.mxu1 %v3799_v19 }
 0x661   : > { %3693 = vmatprep.subr.bf16.mxu1 %v3933_v17 }
 0x664   : > { %3694 = vmatpush3.bf16.msra.mxu1 %v3800_v58 }
 0x707   : > { %v2795_v6 = vpop.f32.mrf.mxu1 }
 0x708   : > { %v2796_v9 = vadd.f32 %v3342_v3, %v2795_v6 }
 0x709   : > { %v3669_v8 = vpop.f32.mrf.mxu1 }
 0x70a   : > { %v2802_v12 = vadd.f32 %v3877_v11, %v2796_v9  ;;  %v3352_v11 = vld [vmem:[%s706_s22] ss:$0 sm:$0xff]  ;;  %s4811_s22 = sld [smem:[#allocation6_spill]] }
 0x70b   : > { %v2798_v14 = vpop.f32.mrf.mxu1 }
 0x70c   : > { %v2799_v15 = vadd.f32 %v3342_v3, %v2798_v14  ;;  %v2806_v16 = vsel %vm821_vm4, %v2802_v12, 0.0 }
 0x70d   : > { %2807 = vadd.xlane.f32.xlu1 %v2806_v16  ;;  %v3670_v60 = vpop.f32.mrf.mxu1 }
 0x70e   : > { %v2803_v63 = vadd.f32 %v3878_v32, %v2799_v15 }
 0x710   : > { %v2809_v57 = vsel %vm821_vm4, %v2803_v63, 0.0  ;;  %s4812_s16 = sadd.s32 4294967295, %s4811_s22  }
 0x711   : > { %2810 = vadd.xlane.f32.xlu0 %v2809_v57  ;;  %p4742_p6 = scmp.eq.s32.totalorder %s4812_s16, 3 }
 0x713   : > { %p3881_p8 = pnand %p3880_p7, %p4742_p6 }
 0x715   : > { %p3882_p9 = pneg %p3881_p8 }
 0x717   : > { %p3889_p13 = pnand %p3888_p12, %p3882_p9 }
 0x796   : > { %v2808_v20 = vpop.xlane.xlu1 %2807 }
 0x797   : > { %v2813_v22 = vmul.f32 0.03125, %v2808_v20 }
 0x799   : > { %v2815_v10 = vsub.f32 %v2802_v12, %v2813_v22 }
 0x79a   : > { %v2811_v62 = vpop.xlane.xlu0 %2810 }
 0x79b   : > { %v2814_v37 = vmul.f32 0.03125, %v2811_v62  ;;  %v2817_v28 = vmul.f32 %v2815_v10, %v2815_v10 }
 0x79d   : > { %v2816_v47 = vsub.f32 %v2803_v63, %v2814_v37  ;;  %v2819_v2 = vsel %vm821_vm4, %v2817_v28, 0.0 }
 0x79e   : > { %2820 = vadd.xlane.f32.xlu0 %v2819_v2 }
 0x79f   : > { %v2818_v35 = vmul.f32 %v2816_v47, %v2816_v47 }
 0x7a1   : > { %v2822_v33 = vsel %vm821_vm4, %v2818_v35, 0.0 }
 0x7a2   : > { %2823 = vadd.xlane.f32.xlu1 %v2822_v33 }
 0x827   : > { %v2821_v31 = vpop.xlane.xlu0 %2820 }
 0x828   : > { %v2825_v39 = vmul.f32 0.03125, %v2821_v31 }
 0x82a   : > { %v2827_v0 = vadd.f32 1e-05, %v2825_v39 }
 0x82b   : > { %v2824_v40 = vpop.xlane.xlu1 %2823 }
 0x82c   : > { %3865 = vrsqrt.f32 %v2827_v0  ;;  %v2826_v49 = vmul.f32 0.03125, %v2824_v40 }
 0x82e   : > { %v2828_v50 = vadd.f32 1e-05, %v2826_v49 }
 0x830   : > { %3867 = vrsqrt.f32 %v2828_v50 }
 0x839   : > { %v3866_v44 = vpop.eup %3865 }
 0x83a   : > { %v2831_v7 = vmul.f32 %v3866_v44, %v2815_v10  ;;  %v3361_v44 = vld [vmem:[%s715_s0] ss:$0 sm:$0xff] }
 0x83c   : > { %v2839_v48 = vmul.f32 %v3346_v52, %v2831_v7 }
 0x83d   : > { %v3868_v45 = vpop.eup %3867 }
 0x83e   : > { %v2832_v43 = vmul.f32 %v3868_v45, %v2816_v47  ;;  %v2847_v51 = vadd.f32 %v3347_v13, %v2839_v48 }
 0x840   : > { %v2840_v42 = vmul.f32 %v3346_v52, %v2832_v43  ;;  %v3362_v52 = vld [vmem:[%s718_s30] ss:$0 sm:$0xff] }
 0x842   : > { %v2848_v5 = vadd.f32 %v3347_v13, %v2840_v42 }
 0x844   : > { %v2853_v18 = vpack.c.bf16 %v2848_v5, %v2847_v51 }
 0x846   : > { %3676 = vmatmul.mubr.msk.bf16.vlgmr.msra.gmra.mxu0 %vm821_vm4, %v2853_v18 }
 0x906   : > { %v2910_v26 = vpop.f32.mrf.mxu0 }
 0x907   : > { %v2911_v29 = vadd.f32 %v3348_v25, %v2910_v26 }
 0x908   : > { %v3677_v23 = vpop.f32.mrf.mxu0 }
 0x909   : > { %v2919_v54 = vmul.f32 0.70710677, %v2911_v29  ;;  %v2917_v30 = vmul.f32 0.5, %v2911_v29 }
 0x90a   : > { %v2913_v55 = vpop.f32.mrf.mxu0 }
 0x90b   : > { %3869 = verf.f32 %v2919_v54  ;;  %v2914_v1 = vadd.f32 %v3348_v25, %v2913_v55 }
 0x90c   : > { %v3678_v61 = vpop.f32.mrf.mxu0 }
 0x90d   : > { %v2920_v34 = vmul.f32 0.70710677, %v2914_v1  ;;  %v2918_v4 = vmul.f32 0.5, %v2914_v1 }
 0x90f   : > { %3871 = verf.f32 %v2920_v34 }
 0x918   : > { %v3870_v24 = vpop.eup %3869 }
 0x919   : > { %v2923_v17 = vadd.f32 1.0, %v3870_v24 }
 0x91b   : > { %v2925_v6 = vmul.f32 %v2923_v17, %v2917_v30 }
 0x91c   : > { %v3872_v21 = vpop.eup %3871 }
 0x91d   : > { %v2924_v3 = vadd.f32 1.0, %v3872_v21 }
 0x91f   : > { %v2926_v9 = vmul.f32 %v2924_v3, %v2918_v4 }
 0x921   : > { %v2943_v8 = vpack.c.bf16 %v2926_v9, %v2925_v6 }
 0x923   : > { %3696 = vmatmul.mubr.bf16.vlgmr.msra.gmra.mxu1 %v2943_v8 }
 0x9e3   : > { %v3033_v12 = vpop.f32.mrf.mxu1 }
 0x9e4   : > { %v3034_v14 = vadd.f32 %v3352_v11, %v3033_v12 }
 0x9e5   : > { %v3697_v15 = vpop.f32.mrf.mxu1 }
 0x9e6   : > { %v3040_v16 = vadd.f32 %v3034_v14, %v2847_v51 }
 0x9e7   : > { %v3036_v60 = vpop.f32.mrf.mxu1 }
 0x9e8   : > { %v3037_v32 = vadd.f32 %v3352_v11, %v3036_v60  ;;  %v3044_v63 = vsel %vm821_vm4, %v3040_v16, 0.0 }
 0x9e9   : > { %3045 = vadd.xlane.f32.xlu0 %v3044_v63  ;;  %v3698_v57 = vpop.f32.mrf.mxu1 }
 0x9ea   : > { %v3041_v20 = vadd.f32 %v3037_v32, %v2848_v5 }
 0x9ec   : > { %v3047_v22 = vsel %vm821_vm4, %v3041_v20, 0.0 }
 0x9ed   : > { %3048 = vadd.xlane.f32.xlu1 %v3047_v22 }
 0xa72   : > { %v3046_v10 = vpop.xlane.xlu0 %3045 }
 0xa73   : > { %v3050_v62 = vmul.f32 0.03125, %v3046_v10 }
 0xa75   : > { %v3052_v37 = vsub.f32 %v3040_v16, %v3050_v62 }
 0xa76   : > { %v3049_v28 = vpop.xlane.xlu1 %3048 }
 0xa77   : > { %v3051_v47 = vmul.f32 0.03125, %v3049_v28  ;;  %v3054_v2 = vmul.f32 %v3052_v37, %v3052_v37 }
 0xa79   : > { %v3053_v35 = vsub.f32 %v3041_v20, %v3051_v47  ;;  %v3056_v33 = vsel %vm821_vm4, %v3054_v2, 0.0 }
 0xa7a   : > { %3057 = vadd.xlane.f32.xlu0 %v3056_v33 }
 0xa7b   : > { %v3055_v59 = vmul.f32 %v3053_v35, %v3053_v35 }
 0xa7d   : > { %v3059_v36 = vsel %vm821_vm4, %v3055_v59, 0.0 }
 0xa7e   : > { %3060 = vadd.xlane.f32.xlu1 %v3059_v36 }
 0xb03   : > { %v3058_v38 = vpop.xlane.xlu0 %3057 }
 0xb04   : > { %v3062_v31 = vmul.f32 0.03125, %v3058_v38 }
 0xb06   : > { %v3064_v39 = vadd.f32 1e-05, %v3062_v31 }
 0xb07   : > { %v3061_v0 = vpop.xlane.xlu1 %3060 }
 0xb08   : > { %3873 = vrsqrt.f32 %v3064_v39  ;;  %v3063_v40 = vmul.f32 0.03125, %v3061_v0 }
 0xb0a   : > { %v3065_v49 = vadd.f32 1e-05, %v3063_v40 }
 0xb0c   : > { %3875 = vrsqrt.f32 %v3065_v49 }
 0xb15   : > { %v3874_v50 = vpop.eup %3873 }
 0xb16   : > { %v3068_v7 = vmul.f32 %v3874_v50, %v3052_v37 }
 0xb18   : > { %v3076_v45 = vmul.f32 %v3361_v44, %v3068_v7 }
 0xb19   : > { %v3876_v43 = vpop.eup %3875 }
 0xb1a   : > { %v3069_v48 = vmul.f32 %v3876_v43, %v3053_v35  ;;  %v3084_v13 = vadd.f32 %v3362_v52, %v3076_v45 }
 0xb1c   : > { %v3077_v42 = vmul.f32 %v3361_v44, %v3069_v48  ;;  %3086 = vst.msk [vmem:[#allocation2] sm:$0xff] %vm821_vm4, %v3084_v13 }
 0xb1e   : > { %v3085_v51 = vadd.f32 %v3362_v52, %v3077_v42 }
 0xb20   : > { %3087 = vst.msk [vmem:[#allocation2 + $0x8] sm:$0xff] %vm821_vm4, %v3085_v51 }
 0xb21   : > { %3892 = shalt.err (!%p3889_p13)
}
 0xb22   : > { %s3952_s0 = smov 128   ;;  %s4814_s8 = sld [smem:[#allocation15_spill]] }
 0xb28   : > { %3700 = dma.vmem_to_hbm [thread:$0]  (%p4742_p6), %s3098_s3, 256, %s4814_s8, [#allocation3], %s3952_s0, %s3952_s0, %s3945_s23  }
 0xb29   : > { %3916 = dma.done.wait (%p4742_p6), [#allocation3], 256  }
 0xb2a   : > { %3918 = vsyncadd (%p4742_p6), [#allocation3], 4294967040 }
 0xb2b PF: > { %s4815_s1 = sld [smem:[#allocation6_spill]] }
 0xb2c   : > { %s4816_s21 = sld [smem:[#allocation5_spill]] }
 0xb2d   : > { %s4817_s22 = sld [smem:[#allocation7_spill]] }
 0xb31   : > { %s27_s23 = sadd.s32 1, %s4815_s1  }
 0xb32   : > { %p24_p0 = scmp.ge.s32.totalorder %s27_s23, 6  }
 0xb34   :  { %26 = sbr.rel (!%p24_p0) target bundleno = 11 (0xb), region = 152 }
 0xb39   :  { %3113 = vsyncpa [#allocation3], 1 }
 0xb3a   :  { %3115 = vsyncpa [#allocation3 + $0x1], 1 }

</bundles_post_ra>
